<compile_context>
chip_gen: v5e
topology: v5e:2x2
jax: 0.10.0
libtpu: 0.0.40
codegen_flags: <defaults>
</compile_context>

<pallas_src>
import functools

import jax
import jax.numpy as jnp
from jax.experimental import pallas as pl
from jax.experimental.pallas import tpu as pltpu

KSIZE = 5
PAD = (KSIZE - 1) // 2


def spatial_attn_kernel(w_ref, colmask_ref, rowmask_ref, x_ref, o_ref, *, H, W):
    # w_ref:       (2*KSIZE*KSIZE,) f32 in SMEM (flattened OIHW conv weight, O=1)
    # colmask_ref: (KSIZE, H*W) f32 — 1.0 where column w + (dw-PAD) is in-image
    # rowmask_ref: (KSIZE, H*W) f32 — 1.0 where row    h + (dh-PAD) is in-image
    # x_ref/o_ref: (Nb, C, H*W) in VMEM (lane-dense flattened spatial)
    HW = H * W

    # --- ChannelPool: max & mean over the channel (sublane) axis, in f32 ---
    x = x_ref[...]
    x_max = jnp.max(x, axis=1).astype(jnp.float32)            # (Nb, HW)
    x_mean = jnp.mean(x, axis=1, dtype=jnp.float32)           # (Nb, HW)
    # The loaded slab dies here; it is re-read below for the gating multiply,
    # so no (nb, C, HW) f32 value stays live across the conv loop.

    # --- column pass: masked lane rolls by dw in [-PAD, PAD] per pooled map ---
    # pltpu.roll follows jnp.roll semantics (result[i] = x[i - shift]), so to
    # fetch pooled[i + off] we roll by shift = (-off) % HW; wrap-around taps are
    # zeroed by the precomputed border masks.
    def col_shifts(pm):
        out = []
        for dwi in range(KSIZE):
            dw = dwi - PAD
            shift = (-dw) % HW
            shifted = pltpu.roll(pm, shift, axis=1) if shift else pm
            out.append(shifted * colmask_ref[dwi])             # fold col mask
        return out

    col = (col_shifts(x_max), col_shifts(x_mean))              # 2 x 5 x (Nb,HW)

    # --- per-dh weighted sum over (channel, dw), then row roll + row mask ---
    acc = None
    for dhi in range(KSIZE):
        tmp = None
        for c in range(2):
            for dwi in range(KSIZE):
                wgt = w_ref[c * KSIZE * KSIZE + dhi * KSIZE + dwi]  # SMEM scalar
                term = wgt * col[c][dwi]
                tmp = term if tmp is None else tmp + term
        dh = dhi - PAD
        shift = (-dh * W) % HW
        rolled = pltpu.roll(tmp, shift, axis=1) if shift else tmp
        contrib = rolled * rowmask_ref[dhi]                    # fold row mask
        acc = contrib if acc is None else acc + contrib

    scale = jax.nn.sigmoid(acc)                                # (Nb, HW) f32

    # --- gating multiply: re-read the resident block, native-dtype math ---
    xb = x_ref[...]
    o_ref[...] = (xb * scale[:, None, :].astype(xb.dtype)).astype(o_ref.dtype)


def _conv_masks(H, W):
    """Border-validity planes for the 5x5 taps on the flattened spatial index."""
    HW = H * W
    p = jnp.arange(HW, dtype=jnp.int32)
    row = p // W
    col = p - row * W
    d = jnp.arange(KSIZE, dtype=jnp.int32)[:, None] - PAD      # (KSIZE, 1)
    colmask = ((col[None, :] + d >= 0) & (col[None, :] + d < W)).astype(jnp.float32)
    rowmask = ((row[None, :] + d >= 0) & (row[None, :] + d < H)).astype(jnp.float32)
    return colmask, rowmask                                    # each (KSIZE, HW)


def _choose_block_batch(N, per_sample_bytes):
    """Generation-aware batch-block size (always a divisor of N)."""
    kind = ""
    try:
        kind = jax.devices()[0].device_kind.lower()
    except Exception:
        pass
    if "v5 lite" in kind or "v5e" in kind or "v5litepod" in kind:
        target_bytes, min_steps = 1 << 20, 2    # 16 MiB scoped VMEM default
    elif "v6" in kind:
        target_bytes, min_steps = 6 << 20, 2    # single TC, large VMEM
    else:                                        # v7x / unknown: 2 TCs
        target_bytes, min_steps = 2 << 20, 8    # >= 3-4 pipelined steps per TC
    nb = max(1, int(target_bytes // max(per_sample_bytes, 1)))
    nb = min(nb, N)
    if N >= min_steps:
        nb = min(nb, max(1, N // min_steps))
    while N % nb:       # no ragged tails: pick a divisor of N
        nb -= 1
    return nb


def spatial_attn(x, w, *, block_batch=None):
    """x: (N, C, H, W); w: (1, 2, KSIZE, KSIZE) conv weight (OIHW, no bias)."""
    N, C, H, W = x.shape
    HW = H * W
    w_flat = w.reshape(-1).astype(jnp.float32)                 # (2*KSIZE*KSIZE,)
    x_flat = x.reshape(N, C, HW)
    colmask, rowmask = _conv_masks(H, W)

    per_sample = C * HW * x.dtype.itemsize
    if block_batch is None:
        nb = _choose_block_batch(N, per_sample)
    else:
        nb = int(block_batch)
        assert N % nb == 0, "block_batch must divide N (ragged tails unsupported)"
    grid = (N // nb,)

    # VMEM budget: 2x double-buffered in + out blocks, conv temporaries, masks.
    block_bytes = nb * per_sample
    conv_bytes = nb * HW * 4 * 16
    est = 4 * block_bytes + conv_bytes + (1 << 20)
    vmem_limit = int(min(48 * 1024 * 1024, max(32 * 1024 * 1024, est)))

    kernel = functools.partial(spatial_attn_kernel, H=H, W=W)
    out = pl.pallas_call(
        kernel,
        out_shape=jax.ShapeDtypeStruct((N, C, HW), x.dtype),
        grid_spec=pltpu.PrefetchScalarGridSpec(
            num_scalar_prefetch=0,
            grid=grid,
            in_specs=[
                pl.BlockSpec(memory_space=pltpu.MemorySpace.SMEM),   # weights
                pl.BlockSpec((KSIZE, HW), lambda n: (0, 0)),         # col masks
                pl.BlockSpec((KSIZE, HW), lambda n: (0, 0)),         # row masks
                pl.BlockSpec((nb, C, HW), lambda n: (n, 0, 0)),      # x slab
            ],
            out_specs=pl.BlockSpec((nb, C, HW), lambda n: (n, 0, 0)),
        ),
        compiler_params=pltpu.CompilerParams(
            dimension_semantics=("parallel",),
            vmem_limit_bytes=vmem_limit),
    )(w_flat, colmask, rowmask, x_flat)
    return out.reshape(N, C, H, W)


if __name__ == "__main__":
    key = jax.random.PRNGKey(0)
    kx, kw = jax.random.split(key)

    N, C, H, W = 2, 4, 16, 16
    x = jax.random.normal(kx, (N, C, H, W), dtype=jnp.float32)

    # Conv2d(2, 1, kernel_size=5, bias=False) weight, deterministic uniform init
    # matching PyTorch's default U(-1/sqrt(fan_in), 1/sqrt(fan_in)).
    fan_in = 2 * KSIZE * KSIZE
    bound = 1.0 / (fan_in ** 0.5)
    w = jax.random.uniform(kw, (1, 2, KSIZE, KSIZE), jnp.float32, -bound, bound)

    out = spatial_attn(x, w)
    jax.block_until_ready(out)

    # Pure-JAX reference for correctness check.
    x_max = jnp.max(x, axis=1, keepdims=True)
    x_mean = jnp.mean(x, axis=1, keepdims=True)
    pooled = jnp.concatenate([x_max, x_mean], axis=1)           # (N, 2, H, W)
    conv = jax.lax.conv_general_dilated(
        pooled, w, window_strides=(1, 1),
        padding=[(PAD, PAD), (PAD, PAD)],
        dimension_numbers=("NCHW", "OIHW", "NCHW"))
    ref = x * jax.nn.sigmoid(conv)

    assert out.shape == x.shape and out.dtype == x.dtype
    assert jnp.allclose(out, ref, atol=1e-5, rtol=1e-5), "mismatch vs reference"
    print("KERNEL_OK")
</pallas_src>

<mosaic_0001>
module attributes {stable_mosaic.version = 11 : i64} {
  func.func @spatial_attn_kernel(%arg0: i32, %arg1: memref<50xf32, #tpu.memory_space<smem>>, %arg2: memref<5x256xf32, #tpu.memory_space<vmem>>, %arg3: memref<5x256xf32, #tpu.memory_space<vmem>>, %arg4: memref<2x4x256xf32, #tpu.memory_space<vmem>>, %arg5: memref<2x4x256xf32, #tpu.memory_space<vmem>>) attributes {dimension_semantics = [#tpu.dimension_semantics<parallel>], iteration_bounds = array<i64: 1>, scalar_prefetch = 0 : i64, scratch_operands = 0 : i64, tpu.core_type = #tpu.core_type<tc>, window_params = [{transform_indices = @transform_0, window_bounds = array<i64: 50>}, {pipeline_mode = #tpu.pipeline_mode<synchronous>, transform_indices = @transform_1, window_bounds = array<i64: 5, 256>}, {pipeline_mode = #tpu.pipeline_mode<synchronous>, transform_indices = @transform_2, window_bounds = array<i64: 5, 256>}, {transform_indices = @transform_3, window_bounds = array<i64: 2, 4, 256>}, {transform_indices = @transform_4, window_bounds = array<i64: 2, 4, 256>}]} {
    %c0 = arith.constant 0 : index
    %c0_0 = arith.constant 0 : index
    %c0_1 = arith.constant 0 : index
    %0 = vector.load %arg4[%c0, %c0_0, %c0_1] : memref<2x4x256xf32, #tpu.memory_space<vmem>>, vector<2x4x256xf32>
    %cst = arith.constant dense<0xFF800000> : vector<2x256xf32>
    %1 = vector.multi_reduction <maximumf>, %0, %cst [1] : vector<2x4x256xf32> to vector<2x256xf32>
    %cst_2 = arith.constant dense<0.000000e+00> : vector<2x256xf32>
    %2 = vector.multi_reduction <add>, %0, %cst_2 [1] : vector<2x4x256xf32> to vector<2x256xf32>
    %cst_3 = arith.constant 4.000000e+00 : f32
    %3 = vector.broadcast %cst_3 : f32 to vector<2x256xf32>
    %4 = arith.divf %2, %3 : vector<2x256xf32>
    %c2_i32 = arith.constant 2 : i32
    %5 = tpu.dynamic_rotate %1 by %c2_i32 dim 1 : vector<2x256xf32>, i32 -> vector<2x256xf32>
    %c0_4 = arith.constant 0 : index
    %c0_5 = arith.constant 0 : index
    %6 = vector.load %arg2[%c0_4, %c0_5] : memref<5x256xf32, #tpu.memory_space<vmem>>, vector<1x256xf32>
    %7 = vector.shape_cast %6 : vector<1x256xf32> to vector<256xf32>
    %8 = vector.shape_cast %7 : vector<256xf32> to vector<1x256xf32>
    %9 = vector.broadcast %8 : vector<1x256xf32> to vector<2x256xf32>
    %10 = arith.mulf %5, %9 : vector<2x256xf32>
    %c1_i32 = arith.constant 1 : i32
    %11 = tpu.dynamic_rotate %1 by %c1_i32 dim 1 : vector<2x256xf32>, i32 -> vector<2x256xf32>
    %c1 = arith.constant 1 : index
    %c0_6 = arith.constant 0 : index
    %12 = vector.load %arg2[%c1, %c0_6] : memref<5x256xf32, #tpu.memory_space<vmem>>, vector<1x256xf32>
    %13 = vector.shape_cast %12 : vector<1x256xf32> to vector<256xf32>
    %14 = vector.shape_cast %13 : vector<256xf32> to vector<1x256xf32>
    %15 = vector.broadcast %14 : vector<1x256xf32> to vector<2x256xf32>
    %16 = arith.mulf %11, %15 : vector<2x256xf32>
    %c2 = arith.constant 2 : index
    %c0_7 = arith.constant 0 : index
    %17 = vector.load %arg2[%c2, %c0_7] : memref<5x256xf32, #tpu.memory_space<vmem>>, vector<1x256xf32>
    %18 = vector.shape_cast %17 : vector<1x256xf32> to vector<256xf32>
    %19 = vector.shape_cast %18 : vector<256xf32> to vector<1x256xf32>
    %20 = vector.broadcast %19 : vector<1x256xf32> to vector<2x256xf32>
    %21 = arith.mulf %1, %20 : vector<2x256xf32>
    %c255_i32 = arith.constant 255 : i32
    %22 = tpu.dynamic_rotate %1 by %c255_i32 dim 1 : vector<2x256xf32>, i32 -> vector<2x256xf32>
    %c3 = arith.constant 3 : index
    %c0_8 = arith.constant 0 : index
    %23 = vector.load %arg2[%c3, %c0_8] : memref<5x256xf32, #tpu.memory_space<vmem>>, vector<1x256xf32>
    %24 = vector.shape_cast %23 : vector<1x256xf32> to vector<256xf32>
    %25 = vector.shape_cast %24 : vector<256xf32> to vector<1x256xf32>
    %26 = vector.broadcast %25 : vector<1x256xf32> to vector<2x256xf32>
    %27 = arith.mulf %22, %26 : vector<2x256xf32>
    %c254_i32 = arith.constant 254 : i32
    %28 = tpu.dynamic_rotate %1 by %c254_i32 dim 1 : vector<2x256xf32>, i32 -> vector<2x256xf32>
    %c4 = arith.constant 4 : index
    %c0_9 = arith.constant 0 : index
    %29 = vector.load %arg2[%c4, %c0_9] : memref<5x256xf32, #tpu.memory_space<vmem>>, vector<1x256xf32>
    %30 = vector.shape_cast %29 : vector<1x256xf32> to vector<256xf32>
    %31 = vector.shape_cast %30 : vector<256xf32> to vector<1x256xf32>
    %32 = vector.broadcast %31 : vector<1x256xf32> to vector<2x256xf32>
    %33 = arith.mulf %28, %32 : vector<2x256xf32>
    %c2_i32_10 = arith.constant 2 : i32
    %34 = tpu.dynamic_rotate %4 by %c2_i32_10 dim 1 : vector<2x256xf32>, i32 -> vector<2x256xf32>
    %c0_11 = arith.constant 0 : index
    %c0_12 = arith.constant 0 : index
    %35 = vector.load %arg2[%c0_11, %c0_12] : memref<5x256xf32, #tpu.memory_space<vmem>>, vector<1x256xf32>
    %36 = vector.shape_cast %35 : vector<1x256xf32> to vector<256xf32>
    %37 = vector.shape_cast %36 : vector<256xf32> to vector<1x256xf32>
    %38 = vector.broadcast %37 : vector<1x256xf32> to vector<2x256xf32>
    %39 = arith.mulf %34, %38 : vector<2x256xf32>
    %c1_i32_13 = arith.constant 1 : i32
    %40 = tpu.dynamic_rotate %4 by %c1_i32_13 dim 1 : vector<2x256xf32>, i32 -> vector<2x256xf32>
    %c1_14 = arith.constant 1 : index
    %c0_15 = arith.constant 0 : index
    %41 = vector.load %arg2[%c1_14, %c0_15] : memref<5x256xf32, #tpu.memory_space<vmem>>, vector<1x256xf32>
    %42 = vector.shape_cast %41 : vector<1x256xf32> to vector<256xf32>
    %43 = vector.shape_cast %42 : vector<256xf32> to vector<1x256xf32>
    %44 = vector.broadcast %43 : vector<1x256xf32> to vector<2x256xf32>
    %45 = arith.mulf %40, %44 : vector<2x256xf32>
    %c2_16 = arith.constant 2 : index
    %c0_17 = arith.constant 0 : index
    %46 = vector.load %arg2[%c2_16, %c0_17] : memref<5x256xf32, #tpu.memory_space<vmem>>, vector<1x256xf32>
    %47 = vector.shape_cast %46 : vector<1x256xf32> to vector<256xf32>
    %48 = vector.shape_cast %47 : vector<256xf32> to vector<1x256xf32>
    %49 = vector.broadcast %48 : vector<1x256xf32> to vector<2x256xf32>
    %50 = arith.mulf %4, %49 : vector<2x256xf32>
    %c255_i32_18 = arith.constant 255 : i32
    %51 = tpu.dynamic_rotate %4 by %c255_i32_18 dim 1 : vector<2x256xf32>, i32 -> vector<2x256xf32>
    %c3_19 = arith.constant 3 : index
    %c0_20 = arith.constant 0 : index
    %52 = vector.load %arg2[%c3_19, %c0_20] : memref<5x256xf32, #tpu.memory_space<vmem>>, vector<1x256xf32>
    %53 = vector.shape_cast %52 : vector<1x256xf32> to vector<256xf32>
    %54 = vector.shape_cast %53 : vector<256xf32> to vector<1x256xf32>
    %55 = vector.broadcast %54 : vector<1x256xf32> to vector<2x256xf32>
    %56 = arith.mulf %51, %55 : vector<2x256xf32>
    %c254_i32_21 = arith.constant 254 : i32
    %57 = tpu.dynamic_rotate %4 by %c254_i32_21 dim 1 : vector<2x256xf32>, i32 -> vector<2x256xf32>
    %c4_22 = arith.constant 4 : index
    %c0_23 = arith.constant 0 : index
    %58 = vector.load %arg2[%c4_22, %c0_23] : memref<5x256xf32, #tpu.memory_space<vmem>>, vector<1x256xf32>
    %59 = vector.shape_cast %58 : vector<1x256xf32> to vector<256xf32>
    %60 = vector.shape_cast %59 : vector<256xf32> to vector<1x256xf32>
    %61 = vector.broadcast %60 : vector<1x256xf32> to vector<2x256xf32>
    %62 = arith.mulf %57, %61 : vector<2x256xf32>
    %c0_24 = arith.constant 0 : index
    %63 = memref.load %arg1[%c0_24] : memref<50xf32, #tpu.memory_space<smem>>
    %64 = vector.broadcast %63 : f32 to vector<2x256xf32>
    %65 = arith.mulf %64, %10 : vector<2x256xf32>
    %c1_25 = arith.constant 1 : index
    %66 = memref.load %arg1[%c1_25] : memref<50xf32, #tpu.memory_space<smem>>
    %67 = vector.broadcast %66 : f32 to vector<2x256xf32>
    %68 = arith.mulf %67, %16 : vector<2x256xf32>
    %69 = arith.addf %65, %68 : vector<2x256xf32>
    %c2_26 = arith.constant 2 : index
    %70 = memref.load %arg1[%c2_26] : memref<50xf32, #tpu.memory_space<smem>>
    %71 = vector.broadcast %70 : f32 to vector<2x256xf32>
    %72 = arith.mulf %71, %21 : vector<2x256xf32>
    %73 = arith.addf %69, %72 : vector<2x256xf32>
    %c3_27 = arith.constant 3 : index
    %74 = memref.load %arg1[%c3_27] : memref<50xf32, #tpu.memory_space<smem>>
    %75 = vector.broadcast %74 : f32 to vector<2x256xf32>
    %76 = arith.mulf %75, %27 : vector<2x256xf32>
    %77 = arith.addf %73, %76 : vector<2x256xf32>
    %c4_28 = arith.constant 4 : index
    %78 = memref.load %arg1[%c4_28] : memref<50xf32, #tpu.memory_space<smem>>
    %79 = vector.broadcast %78 : f32 to vector<2x256xf32>
    %80 = arith.mulf %79, %33 : vector<2x256xf32>
    %81 = arith.addf %77, %80 : vector<2x256xf32>
    %c25 = arith.constant 25 : index
    %82 = memref.load %arg1[%c25] : memref<50xf32, #tpu.memory_space<smem>>
    %83 = vector.broadcast %82 : f32 to vector<2x256xf32>
    %84 = arith.mulf %83, %39 : vector<2x256xf32>
    %85 = arith.addf %81, %84 : vector<2x256xf32>
    %c26 = arith.constant 26 : index
    %86 = memref.load %arg1[%c26] : memref<50xf32, #tpu.memory_space<smem>>
    %87 = vector.broadcast %86 : f32 to vector<2x256xf32>
    %88 = arith.mulf %87, %45 : vector<2x256xf32>
    %89 = arith.addf %85, %88 : vector<2x256xf32>
    %c27 = arith.constant 27 : index
    %90 = memref.load %arg1[%c27] : memref<50xf32, #tpu.memory_space<smem>>
    %91 = vector.broadcast %90 : f32 to vector<2x256xf32>
    %92 = arith.mulf %91, %50 : vector<2x256xf32>
    %93 = arith.addf %89, %92 : vector<2x256xf32>
    %c28 = arith.constant 28 : index
    %94 = memref.load %arg1[%c28] : memref<50xf32, #tpu.memory_space<smem>>
    %95 = vector.broadcast %94 : f32 to vector<2x256xf32>
    %96 = arith.mulf %95, %56 : vector<2x256xf32>
    %97 = arith.addf %93, %96 : vector<2x256xf32>
    %c29 = arith.constant 29 : index
    %98 = memref.load %arg1[%c29] : memref<50xf32, #tpu.memory_space<smem>>
    %99 = vector.broadcast %98 : f32 to vector<2x256xf32>
    %100 = arith.mulf %99, %62 : vector<2x256xf32>
    %101 = arith.addf %97, %100 : vector<2x256xf32>
    %c32_i32 = arith.constant 32 : i32
    %102 = tpu.dynamic_rotate %101 by %c32_i32 dim 1 : vector<2x256xf32>, i32 -> vector<2x256xf32>
    %c0_29 = arith.constant 0 : index
    %c0_30 = arith.constant 0 : index
    %103 = vector.load %arg3[%c0_29, %c0_30] : memref<5x256xf32, #tpu.memory_space<vmem>>, vector<1x256xf32>
    %104 = vector.shape_cast %103 : vector<1x256xf32> to vector<256xf32>
    %105 = vector.shape_cast %104 : vector<256xf32> to vector<1x256xf32>
    %106 = vector.broadcast %105 : vector<1x256xf32> to vector<2x256xf32>
    %107 = arith.mulf %102, %106 : vector<2x256xf32>
    %c5 = arith.constant 5 : index
    %108 = memref.load %arg1[%c5] : memref<50xf32, #tpu.memory_space<smem>>
    %109 = vector.broadcast %108 : f32 to vector<2x256xf32>
    %110 = arith.mulf %109, %10 : vector<2x256xf32>
    %c6 = arith.constant 6 : index
    %111 = memref.load %arg1[%c6] : memref<50xf32, #tpu.memory_space<smem>>
    %112 = vector.broadcast %111 : f32 to vector<2x256xf32>
    %113 = arith.mulf %112, %16 : vector<2x256xf32>
    %114 = arith.addf %110, %113 : vector<2x256xf32>
    %c7 = arith.constant 7 : index
    %115 = memref.load %arg1[%c7] : memref<50xf32, #tpu.memory_space<smem>>
    %116 = vector.broadcast %115 : f32 to vector<2x256xf32>
    %117 = arith.mulf %116, %21 : vector<2x256xf32>
    %118 = arith.addf %114, %117 : vector<2x256xf32>
    %c8 = arith.constant 8 : index
    %119 = memref.load %arg1[%c8] : memref<50xf32, #tpu.memory_space<smem>>
    %120 = vector.broadcast %119 : f32 to vector<2x256xf32>
    %121 = arith.mulf %120, %27 : vector<2x256xf32>
    %122 = arith.addf %118, %121 : vector<2x256xf32>
    %c9 = arith.constant 9 : index
    %123 = memref.load %arg1[%c9] : memref<50xf32, #tpu.memory_space<smem>>
    %124 = vector.broadcast %123 : f32 to vector<2x256xf32>
    %125 = arith.mulf %124, %33 : vector<2x256xf32>
    %126 = arith.addf %122, %125 : vector<2x256xf32>
    %c30 = arith.constant 30 : index
    %127 = memref.load %arg1[%c30] : memref<50xf32, #tpu.memory_space<smem>>
    %128 = vector.broadcast %127 : f32 to vector<2x256xf32>
    %129 = arith.mulf %128, %39 : vector<2x256xf32>
    %130 = arith.addf %126, %129 : vector<2x256xf32>
    %c31 = arith.constant 31 : index
    %131 = memref.load %arg1[%c31] : memref<50xf32, #tpu.memory_space<smem>>
    %132 = vector.broadcast %131 : f32 to vector<2x256xf32>
    %133 = arith.mulf %132, %45 : vector<2x256xf32>
    %134 = arith.addf %130, %133 : vector<2x256xf32>
    %c32 = arith.constant 32 : index
    %135 = memref.load %arg1[%c32] : memref<50xf32, #tpu.memory_space<smem>>
    %136 = vector.broadcast %135 : f32 to vector<2x256xf32>
    %137 = arith.mulf %136, %50 : vector<2x256xf32>
    %138 = arith.addf %134, %137 : vector<2x256xf32>
    %c33 = arith.constant 33 : index
    %139 = memref.load %arg1[%c33] : memref<50xf32, #tpu.memory_space<smem>>
    %140 = vector.broadcast %139 : f32 to vector<2x256xf32>
    %141 = arith.mulf %140, %56 : vector<2x256xf32>
    %142 = arith.addf %138, %141 : vector<2x256xf32>
    %c34 = arith.constant 34 : index
    %143 = memref.load %arg1[%c34] : memref<50xf32, #tpu.memory_space<smem>>
    %144 = vector.broadcast %143 : f32 to vector<2x256xf32>
    %145 = arith.mulf %144, %62 : vector<2x256xf32>
    %146 = arith.addf %142, %145 : vector<2x256xf32>
    %c16_i32 = arith.constant 16 : i32
    %147 = tpu.dynamic_rotate %146 by %c16_i32 dim 1 : vector<2x256xf32>, i32 -> vector<2x256xf32>
    %c1_31 = arith.constant 1 : index
    %c0_32 = arith.constant 0 : index
    %148 = vector.load %arg3[%c1_31, %c0_32] : memref<5x256xf32, #tpu.memory_space<vmem>>, vector<1x256xf32>
    %149 = vector.shape_cast %148 : vector<1x256xf32> to vector<256xf32>
    %150 = vector.shape_cast %149 : vector<256xf32> to vector<1x256xf32>
    %151 = vector.broadcast %150 : vector<1x256xf32> to vector<2x256xf32>
    %152 = arith.mulf %147, %151 : vector<2x256xf32>
    %153 = arith.addf %107, %152 : vector<2x256xf32>
    %c10 = arith.constant 10 : index
    %154 = memref.load %arg1[%c10] : memref<50xf32, #tpu.memory_space<smem>>
    %155 = vector.broadcast %154 : f32 to vector<2x256xf32>
    %156 = arith.mulf %155, %10 : vector<2x256xf32>
    %c11 = arith.constant 11 : index
    %157 = memref.load %arg1[%c11] : memref<50xf32, #tpu.memory_space<smem>>
    %158 = vector.broadcast %157 : f32 to vector<2x256xf32>
    %159 = arith.mulf %158, %16 : vector<2x256xf32>
    %160 = arith.addf %156, %159 : vector<2x256xf32>
    %c12 = arith.constant 12 : index
    %161 = memref.load %arg1[%c12] : memref<50xf32, #tpu.memory_space<smem>>
    %162 = vector.broadcast %161 : f32 to vector<2x256xf32>
    %163 = arith.mulf %162, %21 : vector<2x256xf32>
    %164 = arith.addf %160, %163 : vector<2x256xf32>
    %c13 = arith.constant 13 : index
    %165 = memref.load %arg1[%c13] : memref<50xf32, #tpu.memory_space<smem>>
    %166 = vector.broadcast %165 : f32 to vector<2x256xf32>
    %167 = arith.mulf %166, %27 : vector<2x256xf32>
    %168 = arith.addf %164, %167 : vector<2x256xf32>
    %c14 = arith.constant 14 : index
    %169 = memref.load %arg1[%c14] : memref<50xf32, #tpu.memory_space<smem>>
    %170 = vector.broadcast %169 : f32 to vector<2x256xf32>
    %171 = arith.mulf %170, %33 : vector<2x256xf32>
    %172 = arith.addf %168, %171 : vector<2x256xf32>
    %c35 = arith.constant 35 : index
    %173 = memref.load %arg1[%c35] : memref<50xf32, #tpu.memory_space<smem>>
    %174 = vector.broadcast %173 : f32 to vector<2x256xf32>
    %175 = arith.mulf %174, %39 : vector<2x256xf32>
    %176 = arith.addf %172, %175 : vector<2x256xf32>
    %c36 = arith.constant 36 : index
    %177 = memref.load %arg1[%c36] : memref<50xf32, #tpu.memory_space<smem>>
    %178 = vector.broadcast %177 : f32 to vector<2x256xf32>
    %179 = arith.mulf %178, %45 : vector<2x256xf32>
    %180 = arith.addf %176, %179 : vector<2x256xf32>
    %c37 = arith.constant 37 : index
    %181 = memref.load %arg1[%c37] : memref<50xf32, #tpu.memory_space<smem>>
    %182 = vector.broadcast %181 : f32 to vector<2x256xf32>
    %183 = arith.mulf %182, %50 : vector<2x256xf32>
    %184 = arith.addf %180, %183 : vector<2x256xf32>
    %c38 = arith.constant 38 : index
    %185 = memref.load %arg1[%c38] : memref<50xf32, #tpu.memory_space<smem>>
    %186 = vector.broadcast %185 : f32 to vector<2x256xf32>
    %187 = arith.mulf %186, %56 : vector<2x256xf32>
    %188 = arith.addf %184, %187 : vector<2x256xf32>
    %c39 = arith.constant 39 : index
    %189 = memref.load %arg1[%c39] : memref<50xf32, #tpu.memory_space<smem>>
    %190 = vector.broadcast %189 : f32 to vector<2x256xf32>
    %191 = arith.mulf %190, %62 : vector<2x256xf32>
    %192 = arith.addf %188, %191 : vector<2x256xf32>
    %c2_33 = arith.constant 2 : index
    %c0_34 = arith.constant 0 : index
    %193 = vector.load %arg3[%c2_33, %c0_34] : memref<5x256xf32, #tpu.memory_space<vmem>>, vector<1x256xf32>
    %194 = vector.shape_cast %193 : vector<1x256xf32> to vector<256xf32>
    %195 = vector.shape_cast %194 : vector<256xf32> to vector<1x256xf32>
    %196 = vector.broadcast %195 : vector<1x256xf32> to vector<2x256xf32>
    %197 = arith.mulf %192, %196 : vector<2x256xf32>
    %198 = arith.addf %153, %197 : vector<2x256xf32>
    %c15 = arith.constant 15 : index
    %199 = memref.load %arg1[%c15] : memref<50xf32, #tpu.memory_space<smem>>
    %200 = vector.broadcast %199 : f32 to vector<2x256xf32>
    %201 = arith.mulf %200, %10 : vector<2x256xf32>
    %c16 = arith.constant 16 : index
    %202 = memref.load %arg1[%c16] : memref<50xf32, #tpu.memory_space<smem>>
    %203 = vector.broadcast %202 : f32 to vector<2x256xf32>
    %204 = arith.mulf %203, %16 : vector<2x256xf32>
    %205 = arith.addf %201, %204 : vector<2x256xf32>
    %c17 = arith.constant 17 : index
    %206 = memref.load %arg1[%c17] : memref<50xf32, #tpu.memory_space<smem>>
    %207 = vector.broadcast %206 : f32 to vector<2x256xf32>
    %208 = arith.mulf %207, %21 : vector<2x256xf32>
    %209 = arith.addf %205, %208 : vector<2x256xf32>
    %c18 = arith.constant 18 : index
    %210 = memref.load %arg1[%c18] : memref<50xf32, #tpu.memory_space<smem>>
    %211 = vector.broadcast %210 : f32 to vector<2x256xf32>
    %212 = arith.mulf %211, %27 : vector<2x256xf32>
    %213 = arith.addf %209, %212 : vector<2x256xf32>
    %c19 = arith.constant 19 : index
    %214 = memref.load %arg1[%c19] : memref<50xf32, #tpu.memory_space<smem>>
    %215 = vector.broadcast %214 : f32 to vector<2x256xf32>
    %216 = arith.mulf %215, %33 : vector<2x256xf32>
    %217 = arith.addf %213, %216 : vector<2x256xf32>
    %c40 = arith.constant 40 : index
    %218 = memref.load %arg1[%c40] : memref<50xf32, #tpu.memory_space<smem>>
    %219 = vector.broadcast %218 : f32 to vector<2x256xf32>
    %220 = arith.mulf %219, %39 : vector<2x256xf32>
    %221 = arith.addf %217, %220 : vector<2x256xf32>
    %c41 = arith.constant 41 : index
    %222 = memref.load %arg1[%c41] : memref<50xf32, #tpu.memory_space<smem>>
    %223 = vector.broadcast %222 : f32 to vector<2x256xf32>
    %224 = arith.mulf %223, %45 : vector<2x256xf32>
    %225 = arith.addf %221, %224 : vector<2x256xf32>
    %c42 = arith.constant 42 : index
    %226 = memref.load %arg1[%c42] : memref<50xf32, #tpu.memory_space<smem>>
    %227 = vector.broadcast %226 : f32 to vector<2x256xf32>
    %228 = arith.mulf %227, %50 : vector<2x256xf32>
    %229 = arith.addf %225, %228 : vector<2x256xf32>
    %c43 = arith.constant 43 : index
    %230 = memref.load %arg1[%c43] : memref<50xf32, #tpu.memory_space<smem>>
    %231 = vector.broadcast %230 : f32 to vector<2x256xf32>
    %232 = arith.mulf %231, %56 : vector<2x256xf32>
    %233 = arith.addf %229, %232 : vector<2x256xf32>
    %c44 = arith.constant 44 : index
    %234 = memref.load %arg1[%c44] : memref<50xf32, #tpu.memory_space<smem>>
    %235 = vector.broadcast %234 : f32 to vector<2x256xf32>
    %236 = arith.mulf %235, %62 : vector<2x256xf32>
    %237 = arith.addf %233, %236 : vector<2x256xf32>
    %c240_i32 = arith.constant 240 : i32
    %238 = tpu.dynamic_rotate %237 by %c240_i32 dim 1 : vector<2x256xf32>, i32 -> vector<2x256xf32>
    %c3_35 = arith.constant 3 : index
    %c0_36 = arith.constant 0 : index
    %239 = vector.load %arg3[%c3_35, %c0_36] : memref<5x256xf32, #tpu.memory_space<vmem>>, vector<1x256xf32>
    %240 = vector.shape_cast %239 : vector<1x256xf32> to vector<256xf32>
    %241 = vector.shape_cast %240 : vector<256xf32> to vector<1x256xf32>
    %242 = vector.broadcast %241 : vector<1x256xf32> to vector<2x256xf32>
    %243 = arith.mulf %238, %242 : vector<2x256xf32>
    %244 = arith.addf %198, %243 : vector<2x256xf32>
    %c20 = arith.constant 20 : index
    %245 = memref.load %arg1[%c20] : memref<50xf32, #tpu.memory_space<smem>>
    %246 = vector.broadcast %245 : f32 to vector<2x256xf32>
    %247 = arith.mulf %246, %10 : vector<2x256xf32>
    %c21 = arith.constant 21 : index
    %248 = memref.load %arg1[%c21] : memref<50xf32, #tpu.memory_space<smem>>
    %249 = vector.broadcast %248 : f32 to vector<2x256xf32>
    %250 = arith.mulf %249, %16 : vector<2x256xf32>
    %251 = arith.addf %247, %250 : vector<2x256xf32>
    %c22 = arith.constant 22 : index
    %252 = memref.load %arg1[%c22] : memref<50xf32, #tpu.memory_space<smem>>
    %253 = vector.broadcast %252 : f32 to vector<2x256xf32>
    %254 = arith.mulf %253, %21 : vector<2x256xf32>
    %255 = arith.addf %251, %254 : vector<2x256xf32>
    %c23 = arith.constant 23 : index
    %256 = memref.load %arg1[%c23] : memref<50xf32, #tpu.memory_space<smem>>
    %257 = vector.broadcast %256 : f32 to vector<2x256xf32>
    %258 = arith.mulf %257, %27 : vector<2x256xf32>
    %259 = arith.addf %255, %258 : vector<2x256xf32>
    %c24 = arith.constant 24 : index
    %260 = memref.load %arg1[%c24] : memref<50xf32, #tpu.memory_space<smem>>
    %261 = vector.broadcast %260 : f32 to vector<2x256xf32>
    %262 = arith.mulf %261, %33 : vector<2x256xf32>
    %263 = arith.addf %259, %262 : vector<2x256xf32>
    %c45 = arith.constant 45 : index
    %264 = memref.load %arg1[%c45] : memref<50xf32, #tpu.memory_space<smem>>
    %265 = vector.broadcast %264 : f32 to vector<2x256xf32>
    %266 = arith.mulf %265, %39 : vector<2x256xf32>
    %267 = arith.addf %263, %266 : vector<2x256xf32>
    %c46 = arith.constant 46 : index
    %268 = memref.load %arg1[%c46] : memref<50xf32, #tpu.memory_space<smem>>
    %269 = vector.broadcast %268 : f32 to vector<2x256xf32>
    %270 = arith.mulf %269, %45 : vector<2x256xf32>
    %271 = arith.addf %267, %270 : vector<2x256xf32>
    %c47 = arith.constant 47 : index
    %272 = memref.load %arg1[%c47] : memref<50xf32, #tpu.memory_space<smem>>
    %273 = vector.broadcast %272 : f32 to vector<2x256xf32>
    %274 = arith.mulf %273, %50 : vector<2x256xf32>
    %275 = arith.addf %271, %274 : vector<2x256xf32>
    %c48 = arith.constant 48 : index
    %276 = memref.load %arg1[%c48] : memref<50xf32, #tpu.memory_space<smem>>
    %277 = vector.broadcast %276 : f32 to vector<2x256xf32>
    %278 = arith.mulf %277, %56 : vector<2x256xf32>
    %279 = arith.addf %275, %278 : vector<2x256xf32>
    %c49 = arith.constant 49 : index
    %280 = memref.load %arg1[%c49] : memref<50xf32, #tpu.memory_space<smem>>
    %281 = vector.broadcast %280 : f32 to vector<2x256xf32>
    %282 = arith.mulf %281, %62 : vector<2x256xf32>
    %283 = arith.addf %279, %282 : vector<2x256xf32>
    %c224_i32 = arith.constant 224 : i32
    %284 = tpu.dynamic_rotate %283 by %c224_i32 dim 1 : vector<2x256xf32>, i32 -> vector<2x256xf32>
    %c4_37 = arith.constant 4 : index
    %c0_38 = arith.constant 0 : index
    %285 = vector.load %arg3[%c4_37, %c0_38] : memref<5x256xf32, #tpu.memory_space<vmem>>, vector<1x256xf32>
    %286 = vector.shape_cast %285 : vector<1x256xf32> to vector<256xf32>
    %287 = vector.shape_cast %286 : vector<256xf32> to vector<1x256xf32>
    %288 = vector.broadcast %287 : vector<1x256xf32> to vector<2x256xf32>
    %289 = arith.mulf %284, %288 : vector<2x256xf32>
    %290 = arith.addf %244, %289 : vector<2x256xf32>
    %291 = arith.negf %290 : vector<2x256xf32>
    %292 = math.exp %291 : vector<2x256xf32>
    %cst_39 = arith.constant 1.000000e+00 : f32
    %293 = vector.broadcast %cst_39 : f32 to vector<2x256xf32>
    %294 = arith.addf %293, %292 : vector<2x256xf32>
    %295 = arith.divf %293, %294 : vector<2x256xf32>
    %c0_40 = arith.constant 0 : index
    %c0_41 = arith.constant 0 : index
    %c0_42 = arith.constant 0 : index
    %296 = vector.load %arg4[%c0_40, %c0_41, %c0_42] : memref<2x4x256xf32, #tpu.memory_space<vmem>>, vector<2x4x256xf32>
    %297 = vector.shape_cast %295 : vector<2x256xf32> to vector<2x1x256xf32>
    %298 = vector.broadcast %297 : vector<2x1x256xf32> to vector<2x4x256xf32>
    %299 = arith.mulf %296, %298 : vector<2x4x256xf32>
    %c0_43 = arith.constant 0 : index
    %c0_44 = arith.constant 0 : index
    %c0_45 = arith.constant 0 : index
    %300 = vector.load %arg5[%c0_43, %c0_44, %c0_45] : memref<2x4x256xf32, #tpu.memory_space<vmem>>, vector<2x4x256xf32>
    tpu.vector_store %arg5[%c0_43, %c0_44, %c0_45], %299 {strides = array<i32>} : memref<2x4x256xf32, #tpu.memory_space<vmem>>, vector<2x4x256xf32>,
    return
  }
  func.func @transform_0(%arg0: i32) -> i32 {
    %c0_i32 = arith.constant 0 : i32
    %c0_i32_0 = arith.constant 0 : i32
    return %c0_i32 : i32
  }
  func.func @transform_1(%arg0: i32) -> (i32, i32) {
    %c0_i32 = arith.constant 0 : i32
    %c0_i32_0 = arith.constant 0 : i32
    %c0_i32_1 = arith.constant 0 : i32
    return %c0_i32, %c0_i32_0 : i32, i32
  }
  func.func @transform_2(%arg0: i32) -> (i32, i32) {
    %c0_i32 = arith.constant 0 : i32
    %c0_i32_0 = arith.constant 0 : i32
    %c0_i32_1 = arith.constant 0 : i32
    return %c0_i32, %c0_i32_0 : i32, i32
  }
  func.func @transform_3(%arg0: i32) -> (i32, i32, i32) {
    %c0_i32 = arith.constant 0 : i32
    %c0_i32_0 = arith.constant 0 : i32
    %c0_i32_1 = arith.constant 0 : i32
    return %arg0, %c0_i32, %c0_i32_0 : i32, i32, i32
  }
  func.func @transform_4(%arg0: i32) -> (i32, i32, i32) {
    %c0_i32 = arith.constant 0 : i32
    %c0_i32_0 = arith.constant 0 : i32
    %c0_i32_1 = arith.constant 0 : i32
    return %arg0, %c0_i32, %c0_i32_0 : i32, i32, i32
  }
}

</mosaic_0001>

<bundles_post_ra>
// kernel: tpu_custom_call.1
= control target key start
LH: loop header
LB: loop body
LE: loop exit
PB: predicated region body
PF: predicated region fallthrough
CT: control target
= control target key end

     0   :  { %9 = vsyncpa [#allocation5], 0  ;;  %s1773_s0 = inlined_call_operand.hbm [shape: f32[50], index: 0, kind: input, shape index: {}]   ;;  %s1774_s1 = inlined_call_operand.hbm [shape: f32[5,256], index: 1, kind: input, shape index: {}]   ;;  %s1775_s2 = inlined_call_operand.hbm [shape: f32[5,256], index: 2, kind: input, shape index: {}]   ;;  %s1776_s3 = inlined_call_operand.hbm [shape: f32[2,4,256], index: 3, kind: input, shape index: {}]   ;;  %s1777_s4 = inlined_call_operand.hbm [shape: f32[2,4,256], index: 4, kind: output, shape index: {}]  }
   0x1   :  { %10 = vsyncpa [#allocation3], 0 }
   0x2   :  { %11 = vsyncpa [#allocation8], 0  ;;  %s38_s17 = sshll.u32 %s1775_s2, 4  ;;  %s39_s17 = int_to_ptr.hbm [resolvable:$true] %s38_s17 }
   0x3   :  { %12 = vsyncpa [#allocation4], 0  ;;  %s1060_s18 = smov [#allocation7]   ;;  %s18_s22 = sshll.u32 %s1773_s0, 4  ;;  %s19_s22 = int_to_ptr.hbm [resolvable:$true] %s18_s22 }
   0x4   :  { %s40_s19 = sshll.u32 %s1060_s18, 4  ;;  %s1061_s23 = smov [#allocation2]   ;;  %s41_s19 = int_to_ptr.vmem [resolvable:$true] %s40_s19 }
   0x5   :  { %43 = dma.hbm_to_vmem [thread:$0]  %s39_s17, 256, %s41_s19, [#allocation8]  }
   0x6   :  { %21 = dma.hbm_to_smem %s19_s22, 16, %s1061_s23, [#allocation5]  }
   0x7   :  { %s27_s26 = sshll.u32 %s1774_s1, 4  ;;  %s1062_s27 = smov [#allocation6]   ;;  %s28_s26 = int_to_ptr.hbm [resolvable:$true] %s27_s26 }
   0x8   :  { %s29_s2 = sshll.u32 %s1062_s27, 4  ;;  %s48_s30 = sshll.u32 %s1776_s3, 4  ;;  %s30_s2 = int_to_ptr.vmem [resolvable:$true] %s29_s2  ;;  %s49_s30 = int_to_ptr.hbm [resolvable:$true] %s48_s30 }
   0x9   :  { %32 = dma.hbm_to_vmem [thread:$0]  %s28_s26, 256, %s30_s2, [#allocation3]  }
   0xa   :  { %s1063_s5 = smov [#allocation9]   ;;  %s1064_s6 = smov 128  }
   0xb   :  { %s50_s0 = sshll.u32 %s1063_s5, 4  ;;  %s1065_s7 = smov 8   ;;  %s51_s0 = int_to_ptr.vmem [resolvable:$true] %s50_s0 }
   0xc   :  { %56 = dma.hbm_to_vmem [thread:$0]  %s49_s30, 256, %s51_s0, [#allocation8], %s1064_s6, %s1064_s6, %s1065_s7  }
   0xd   :  { %1052 = dma.done.wait [#allocation5], 16  }
   0xe   :  { %1053 = vsyncadd [#allocation5], 4294967280 }
   0xf   :  { %1054 = dma.done.wait [#allocation3], 256  }
  0x10   :  { %1055 = vsyncadd [#allocation3], 4294967040 }
  0x11   :  { %1056 = dma.done.wait [#allocation8], 512  }
  0x12   :  { %1057 = vsyncadd [#allocation8], 4294966784 }
  0x13   :  { %73 = sfence }
  0x14   :  { %v1116_v0 = vld [vmem:[#allocation9] sm:$0xff]  ;;  %v1118_v1 = vld [vmem:[#allocation9 + $0x8] sm:$0xff]  ;;  %vm89_vm0 = vcmask 1043456   ;;  %v1066_v13 = vmov 4.0   ;;  %vm172_vm1 = vcmask 1041409   ;;  %s1067_s1 = smov 1  }
  0x15   :  { %1791 = vst [vmem:[#allocation15_spill] sm:$0xff] %v1116_v0  ;;  %934 = vrcp.f32 %v1066_v13  ;;  %s1068_s3 = smov 2   ;;  %s1069_s8 = smov 127  }
  0x16   :  { %1792 = vst [vmem:[#allocation16_spill] sm:$0xff] %v1118_v1  ;;  %s1070_s9 = smov 126   ;;  %s888_s10 = sld [smem:[#allocation2 + $0xc]] }
  0x17   :  { %78 = vst [vmem:[#allocation1] ss:$2 sm:$0xff] %v1116_v0  ;;  %s868_s11 = sld [smem:[#allocation2 + $0x2]] }
  0x18   :  { %82 = vst [vmem:[#allocation1 + $0x10] ss:$2 sm:$0xff] %v1118_v1  ;;  %s878_s12 = sld [smem:[#allocation2 + $0x7]] }
  0x19   :  { %s898_s13 = sld [smem:[#allocation2 + $0x11]] }
  0x1a   :  { %s908_s14 = sld [smem:[#allocation2 + $0x16]] }
  0x1b   :  { %v935_v24 = vpop.eup %934  ;;  %s1176_s15 = sld [smem:[#allocation2 + $0x3]] }
  0x1c   :  { %v158_v33 = vmul.f32 4.0, %v935_v24  ;;  %vm162_vm2 = vweird.f32 %v935_v24  ;;  %s1178_s16 = sld [smem:[#allocation2 + $0x8]] }
  0x1d   :  { %s1184_s17 = sld [smem:[#allocation2 + $0xd]] }
  0x1e   :  { %v79_v2 = vld.sshfl [vmem:[#allocation1] sm:$0xff pattern:$0x75316420]  ;;  %v80_v3 = vld.sshfl [vmem:[#allocation1 + $0x8] sm:$0xff pattern:$0x75316420] }
  0x1f   :  { %v83_v4 = vld.sshfl [vmem:[#allocation1 + $0x10] sm:$0xff pattern:$0x75316420]  ;;  %v90_v5 = vsel %vm89_vm0, %v79_v2, -inf  ;;  %v97_v6 = vsel %vm89_vm0, %v80_v3, -inf  ;;  %v159_v42 = vsub.f32 1.0, %v158_v33 }
  0x20   :  { %v91_v7 = vrot.slane %v90_v5, 4  ;;  %v104_v8 = vsel %vm89_vm0, %v83_v4, -inf  ;;  %v84_v9 = vld.sshfl [vmem:[#allocation1 + $0x18] sm:$0xff pattern:$0x75316420]  ;;  %v98_v10 = vrot.slane %v97_v6, 4 }
  0x21   :  { %v105_v11 = vrot.slane %v104_v8, 4  ;;  %v111_v12 = vsel %vm89_vm0, %v84_v9, -inf  ;;  %118 = vst [vmem:[#allocation1] ss:$2 sm:$0xff] %v1116_v0  ;;  %v160_v48 = vmul.f32 %v935_v24, %v159_v42  ;;  %s1186_s18 = sld [smem:[#allocation2 + $0x12]] }
  0x22   :  { %v92_v14 = vmax.f32 %v90_v5, %v91_v7  ;;  %v99_v15 = vmax.f32 %v97_v6, %v98_v10  ;;  %v112_v16 = vrot.slane %v111_v12, 4  ;;  %122 = vst [vmem:[#allocation1 + $0x10] ss:$2 sm:$0xff] %v1118_v1  ;;  %s1188_s19 = sld [smem:[#allocation2 + $0x17]] }
  0x23   :  { %v106_v17 = vmax.f32 %v104_v8, %v105_v11  ;;  %v161_v54 = vadd.f32 %v935_v24, %v160_v48  ;;  %s1190_s20 = sld [smem:[#allocation2 + $0x1]] }
  0x24   :  { %v93_v18 = vrot.slane %v92_v14, 2  ;;  %v100_v19 = vrot.slane %v99_v15, 2  ;;  %v113_v20 = vmax.f32 %v111_v12, %v112_v16  ;;  %s1192_s21 = sld [smem:[#allocation2 + $0x6]] }
  0x25   :  { %v107_v21 = vrot.slane %v106_v17, 2  ;;  %v163_v2 = vsel %vm162_vm2, %v935_v24, %v161_v54  ;;  %v505_v24 = vstv %s888_s10  ;;  %s1194_s22 = sld [smem:[#allocation2 + $0xb]] }
  0x26   :  { %v94_v22 = vmax.f32 %v92_v14, %v93_v18  ;;  %v114_v23 = vrot.slane %v113_v20, 2  ;;  %v101_v26 = vmax.f32 %v99_v15, %v100_v19  ;;  %v211_v19 = vld [vmem:[#allocation6 + $0x2] ss:$8 sm:$0x3]  ;;  %s1196_s23 = sld [smem:[#allocation2 + $0x10]] }
  0x27   :  { %v108_v25 = vmax.f32 %v106_v17, %v107_v21  ;;  %v1171_v21 = vperm.slane %v211_v19, 1  ;;  %s1198_s24 = sld [smem:[#allocation2 + $0x15]] }
  0x28   :  { %v95_v27 = vrot.slane %v94_v22, 1  ;;  %v115_v28 = vmax.f32 %v113_v20, %v114_v23  ;;  %v119_v29 = vld.sshfl [vmem:[#allocation1] sm:$0xff pattern:$0x75316420]  ;;  %v102_v35 = vrot.slane %v101_v26, 1  ;;  %v1169_v20 = vperm.slane %v211_v19, 0 }
  0x29   :  { %v109_v30 = vrot.slane %v108_v25, 1  ;;  %v129_v32 = vsel %vm89_vm0, %v119_v29, 0.0  ;;  %v123_v37 = vld.sshfl [vmem:[#allocation1 + $0x10] sm:$0xff pattern:$0x75316420]  ;;  %s1200_s25 = sld [smem:[#allocation2]]  ;;  %v616_v19 = vstv %s1186_s18 }
  0x2a   :  { %v1128_v31 = vmax.f32 %v94_v22, %v95_v27  ;;  %v116_v36 = vrot.slane %v115_v28, 1  ;;  %v120_v38 = vld.sshfl [vmem:[#allocation1 + $0x8] sm:$0xff pattern:$0x75316420]  ;;  %v130_v40 = vrot.slane %v129_v32, 4  ;;  %v143_v41 = vsel %vm89_vm0, %v123_v37, 0.0 }
  0x2b   :  { %v1131_v34 = vmax.f32 %v108_v25, %v109_v30  ;;  %v1139_v43 = vmax.f32 %v101_v26, %v102_v35  ;;  %v136_v45 = vsel %vm89_vm0, %v120_v38, 0.0  ;;  %v144_v47 = vrot.slane %v143_v41, 4  ;;  %v124_v51 = vld.sshfl [vmem:[#allocation1 + $0x18] sm:$0xff pattern:$0x75316420]  ;;  %s1208_s26 = sld [smem:[#allocation2 + $0x5]] }
  0x2c   :  { %v117_v44 = vmax.f32 %v115_v28, %v116_v36  ;;  %v131_v46 = vadd.f32 %v130_v40, %v129_v32  ;;  %v137_v49 = vrot.slane %v136_v45, 4  ;;  %v150_v56 = vsel %vm89_vm0, %v124_v51, 0.0  ;;  %s1210_s27 = sld [smem:[#allocation2 + $0xa]] }
  0x2d   :  { %v173_v39 = vsel %vm172_vm1, %v1131_v34, %v1128_v31  ;;  %v145_v53 = vadd.f32 %v144_v47, %v143_v41  ;;  %v151_v59 = vrot.slane %v150_v56, 4  ;;  %v219_v22 = vmul.f32 %v1169_v20, %v1131_v34  ;;  %s1212_s2 = sld [smem:[#allocation2 + $0xf]] }
  0x2e   :  { %194 = vrot.lane.b32.xlu1 %v173_v39, %s1067_s1  ;;  %177 = vrot.lane.b32.xlu0 %v173_v39, %s1068_s3  ;;  %v174_v50 = vsel %vm172_vm1, %v117_v44, %v1139_v43  ;;  %v132_v52 = vrot.slane %v131_v46, 2  ;;  %v138_v55 = vadd.f32 %v137_v49, %v136_v45  ;;  %v220_v23 = vmul.f32 %v1171_v21, %v117_v44  ;;  %s1214_s28 = sld [smem:[#allocation2 + $0x14]] }
  0x2f   :  { %221 = vrot.lane.b32.xlu2 %v173_v39, %s1069_s8  ;;  %v146_v58 = vrot.slane %v145_v53, 2  ;;  %v152_v63 = vadd.f32 %v151_v59, %v150_v56  ;;  %v217_v25 = vmul.f32 %v1169_v20, %v1128_v31  ;;  %v508_v26 = vmul.f32 %v505_v24, %v219_v22  ;;  %s1220_s29 = sld [smem:[#allocation2 + $0x4]] }
  0x30   :  { %v133_v57 = vadd.f32 %v132_v52, %v131_v46  ;;  %v139_v60 = vrot.slane %v138_v55, 2  ;;  %v218_v27 = vmul.f32 %v1171_v21, %v1139_v43  ;;  %v509_v28 = vmul.f32 %v505_v24, %v220_v23  ;;  %s1224_s30 = sld [smem:[#allocation2 + $0x9]] }
  0x31   :  { %v147_v62 = vadd.f32 %v146_v58, %v145_v53  ;;  %v153_v6 = vrot.slane %v152_v63, 2  ;;  %v506_v29 = vmul.f32 %v505_v24, %v217_v25  ;;  %v514_v30 = vrot.slane %v508_v26, 7  ;;  %s1228_s5 = sld [smem:[#allocation2 + $0xe]] }
  0x32   :  { %v134_v61 = vrot.slane %v133_v57, 1  ;;  %v140_v3 = vadd.f32 %v139_v60, %v138_v55  ;;  %v507_v32 = vmul.f32 %v505_v24, %v218_v27  ;;  %v516_v33 = vrot.slane %v509_v28, 7  ;;  %s1236_s0 = sld [smem:[#allocation2 + $0x13]] }
  0x33   :  { %v148_v5 = vrot.slane %v147_v62, 1  ;;  %v154_v10 = vadd.f32 %v153_v6, %v152_v63  ;;  %v308_v31 = vstv %s868_s11  ;;  %v405_v34 = vstv %s878_s12  ;;  %v1257_v6 = vld [vmem:[#allocation6 + $0x3] ss:$8 sm:$0x3]  ;;  %s1296_s10 = sld [smem:[#allocation2 + $0x19]] }
  0x34   :  { %v135_v4 = vadd.f32 %v134_v61, %v133_v57  ;;  %v141_v7 = vrot.slane %v140_v3, 1  ;;  %v1203_v35 = vsel %vm172_vm1, %v514_v30, %v506_v29  ;;  %v1206_v36 = vsel %vm172_vm1, %v516_v33, %v507_v32  ;;  %s1301_s11 = sld [smem:[#allocation2 + $0x24]]  ;;  %v1310_v33 = vld [vmem:[#allocation6 + $0x4] ss:$8 sm:$0x3] }
  0x35   :  { %v149_v8 = vadd.f32 %v148_v5, %v147_v62  ;;  %v155_v13 = vrot.slane %v154_v10, 1  ;;  %v598_v37 = vstv %s898_s13  ;;  %v408_v40 = vmul.f32 %v405_v34, %v219_v22  ;;  %s1319_s12 = sld [smem:[#allocation2 + $0x1a]] }
  0x36   :  { %196 = vrot.lane.b32.xlu1 %v174_v50, %s1067_s1  ;;  %179 = vrot.lane.b32.xlu0 %v174_v50, %s1068_s3  ;;  %v1149_v9 = vmul.f32 %v163_v2, %v135_v4  ;;  %v142_v11 = vadd.f32 %v141_v7, %v140_v3  ;;  %v698_v41 = vstv %s908_s14  ;;  %v312_v42 = vmul.f32 %v308_v31, %v220_v23  ;;  %s1325_s13 = sld [smem:[#allocation2 + $0x1e]] }
  0x37   :  { %223 = vrot.lane.b32.xlu2 %v174_v50, %s1069_s8  ;;  %v1151_v12 = vmul.f32 %v163_v2, %v149_v8  ;;  %v156_v15 = vadd.f32 %v155_v13, %v154_v10  ;;  %v181_v43 = vlaneseq  ;;  %v601_v44 = vmul.f32 %v598_v37, %v219_v22  ;;  %v1262_v8 = vld [vmem:[#allocation6 + $0x1] ss:$8 sm:$0x3]  ;;  %s1330_s14 = sld [smem:[#allocation2 + $0x1f]] }
  0x38   :  { %v1156_v16 = vmul.f32 %v163_v2, %v142_v11  ;;  %v309_v45 = vmul.f32 %v308_v31, %v217_v25  ;;  %v1216_v46 = vmul.f32 %v405_v34, %v220_v23  ;;  %v1218_v47 = vmul.f32 %v598_v37, %v220_v23  ;;  %s1505_s18 = sld [smem:[#allocation2 + $0x28]] }
  0x39   :  { %v257_v14 = vsel %vm172_vm1, %v1151_v12, %v1149_v9  ;;  %v1159_v17 = vmul.f32 %v163_v2, %v156_v15  ;;  %v406_v49 = vmul.f32 %v405_v34, %v217_v25  ;;  %v1222_v51 = vmul.f32 %v698_v41, %v220_v23 }
  0x3a   :  { %v414_v52 = vrot.slane %v408_v40, 7  ;;  %v310_v53 = vmul.f32 %v308_v31, %v218_v27  ;;  %v319_v54 = vrot.slane %v312_v42, 7  ;;  %v1226_v55 = vand.u32 127, %v181_v43 }
  0x3b   :  { %v258_v18 = vsel %vm172_vm1, %v1159_v17, %v1156_v16  ;;  %1793 = vst [vmem:[#allocation17_spill] sm:$0xff] %v1222_v51  ;;  %v607_v56 = vrot.slane %v601_v44, 7  ;;  %v1230_v57 = vmul.f32 %v698_v41, %v217_v25  ;;  %v1232_v58 = vmul.f32 %v698_v41, %v219_v22 }
  0x3c   :  { %v1234_v59 = vmul.f32 %v405_v34, %v218_v27  ;;  %v416_v60 = vrot.slane %v1216_v46, 7  ;;  %v600_v61 = vmul.f32 %v598_v37, %v218_v27  ;;  %v609_v62 = vrot.slane %v1218_v47, 7 }
  0x3d   :  { %1794 = vst [vmem:[#allocation18_spill] sm:$0xff] %v1230_v57  ;;  %v1240_v63 = vmul.f32 %v698_v41, %v218_v27  ;;  %v1247_v3 = vmul.f32 %v1169_v20, %v1149_v9  ;;  %v1251_v4 = vmul.f32 %v1169_v20, %v1151_v12  ;;  %v1255_v5 = vmul.f32 %v1171_v21, %v1156_v16 }
  0x3e   :  { %239 = vrot.lane.b32.xlu1 %v174_v50, %s1070_s9  ;;  %237 = vrot.lane.b32.xlu0 %v173_v39, %s1070_s9  ;;  %v311_v39 = vmul.f32 %v308_v31, %v219_v22  ;;  %v599_v50 = vmul.f32 %v598_v37, %v217_v25  ;;  %1795 = vst [vmem:[#allocation19_spill] sm:$0xff] %v1232_v58  ;;  %vm225_vm3 = vcmp.lt.s32.totalorder %v1226_v55, 127  ;;  %v326_v13 = vstv %s1176_s15  ;;  %v1288_v22 = vld [vmem:[#allocation6] ss:$8 sm:$0x3]  ;;  %s1340_s15 = sld [smem:[#allocation2 + $0x1c]] }
  0x3f   :  { %261 = vrot.lane.b32.xlu2 %v257_v14, %s1068_s3  ;;  %1796 = vst [vmem:[#allocation20_spill] sm:$0xff] %v1240_v63  ;;  %v1265_v9 = vsel %vm172_vm1, %v319_v54, %v310_v53  ;;  %v1270_v10 = vsel %vm172_vm1, %v414_v52, %v406_v49  ;;  %v1277_v12 = vmul.f32 %v1171_v21, %v1159_v17  ;;  %v523_v15 = vstv %s1184_s17  ;;  %s1363_s17 = sld [smem:[#allocation2 + $0x1d]] }
  0x40   :  { %v317_v48 = vrot.slane %v311_v39, 7  ;;  %v1779_v16 = vperm.slane %v1257_v6, 0  ;;  %v716_v20 = vstv %s1188_s19  ;;  %v1783_v23 = vperm.slane %v1262_v8, 0  ;;  %s1511_s19 = sld [smem:[#allocation2 + $0x29]] }
  0x41   :  { %1797 = vst [vmem:[#allocation21_spill] sm:$0xff] %v1277_v12  ;;  %v1782_v24 = vperm.slane %v1262_v8, 1  ;;  %v302_v25 = vstv %s1190_s20  ;;  %v399_v26 = vstv %s1192_s21  ;;  %v499_v27 = vstv %s1194_s22  ;;  %s1561_s20 = sld [smem:[#allocation2 + $0x2a]] }
  0x42   :  { %v1273_v11 = vsel %vm172_vm1, %v317_v48, %v309_v45  ;;  %v1304_v28 = vsel %vm172_vm1, %v607_v56, %v599_v50  ;;  %vm198_vm4 = vcmp.lt.s32.totalorder %v1226_v55, 1  ;;  %v592_v29 = vstv %s1196_s23  ;;  %s1567_s21 = sld [smem:[#allocation2 + $0x22]] }
  0x43   :  { %v1781_v32 = vperm.slane %v1288_v22, 0  ;;  %vm183_vm5 = vcmp.lt.s32.totalorder %v1226_v55, 2  ;;  %v1780_v37 = vperm.slane %v1288_v22, 1  ;;  %v395_v40 = vstv %s1208_s26  ;;  %s1580_s22 = sld [smem:[#allocation2 + $0x2b]] }
  0x44   :  { %v495_v41 = vstv %s1210_s27  ;;  %v1333_v49 = vsel %vm172_vm1, %v609_v62, %v600_v61  ;;  %vm241_vm6 = vcmp.lt.s32.totalorder %v1226_v55, 126  ;;  %v1806_v0 = vstv %s1212_s2  ;;  %s1589_s23 = sld [smem:[#allocation2 + $0x2c]]  ;;  %s1071_s2 = smov 32  }
  0x45   :  { %v1807_v58 = vmov %v1806_v0  ;;  %s1670_s26 = sld [smem:[#allocation2 + $0x2e]]  ;;  %vm383_vm7 = vcmp.lt.s32.totalorder %v1226_v55, 32  ;;  %vm480_vm8 = vcmp.lt.s32.totalorder %v1226_v55, 16  ;;  %vm673_vm9 = vcmp.lt.s32.totalorder %v1226_v55, 112 }
  0x46   :  { %269 = vrot.lane.b32.xlu1 %v257_v14, %s1067_s1  ;;  %263 = vrot.lane.b32.xlu0 %v258_v18, %s1068_s3  ;;  %s1259_s3 = sld [smem:[#allocation2 + $0x23]]  ;;  %vm773_vm10 = vcmp.lt.s32.totalorder %v1226_v55, 96 }
  0x47   :  { %271 = vrot.lane.b32.xlu2 %v258_v18, %s1067_s1  ;;  %s1242_s1 = sld [smem:[#allocation2 + $0x18]] }
  0x48   :  { %s1676_s27 = sld [smem:[#allocation2 + $0x30]] }
  0x4e   :  { %283 = vrot.lane.b32.xlu1 %v258_v18, %s1069_s8  ;;  %281 = vrot.lane.b32.xlu0 %v257_v14, %s1069_s8  ;;  %s1267_s8 = sld [smem:[#allocation2 + $0x1b]] }
  0x4f   :  { %289 = vrot.lane.b32.xlu2 %v257_v14, %s1070_s9  ;;  %v423_v14 = vstv %s1178_s16  ;;  %s1353_s16 = sld [smem:[#allocation2 + $0x21]] }
  0x54   :  { %v1338_v53 = vstv %s1267_s8  ;;  %s1075_s8 = smov [#allocation10]  }
  0x56   :  { %291 = vrot.lane.b32.xlu0 %v258_v18, %s1070_s9  ;;  %s1282_s9 = sld [smem:[#allocation2 + $0x20]]  ;;  %v1778_v18 = vperm.slane %v1257_v6, 1 }
  0x5c   :  { %v1343_v54 = vstv %s1282_s9  ;;  %s850_s9 = sshll.u32 %s1075_s8, 4  ;;  %s851_s9 = int_to_ptr.vmem [resolvable:$true] %s850_s9 }
  0x5d   :  { %1798 = vst [vmem:[#allocation22_spill] sm:$0xff] %v1343_v54  ;;  %v450_v61 = vmul.f32 %v1343_v54, %v1251_v4  ;;  %v448_v52 = vmul.f32 %v1343_v54, %v1247_v3 }
  0x5f   :  { %v456_v50 = vrot.slane %v450_v61, 7 }
  0x89   :  { %v222_v38 = vpop.permute.xlu2 %221 }
  0x91   :  { %v224_v7 = vpop.permute.xlu2 %223 }
  0x92   :  { %v226_v17 = vsel %vm225_vm3, %v222_v38, %v224_v7  ;;  %v227_v21 = vsel %vm225_vm3, %v224_v7, %v222_v38  ;;  %v298_v38 = vstv %s1200_s25  ;;  %s1659_s25 = sld [smem:[#allocation2 + $0x2f]] }
  0x93   :  { %v235_v31 = vmul.f32 %v1779_v16, %v226_v17  ;;  %v236_v34 = vmul.f32 %v1778_v18, %v227_v21  ;;  %v354_v17 = vmul.f32 %v1338_v53, %v1277_v12 }
  0x95   :  { %v1345_v56 = vmul.f32 %v326_v13, %v235_v31  ;;  %v1347_v7 = vmul.f32 %v326_v13, %v236_v34  ;;  %v1355_v62 = vmul.f32 %v423_v14, %v235_v31  ;;  %v1357_v21 = vmul.f32 %v423_v14, %v236_v34 }
  0x96   :  { %v1359_v2 = vmul.f32 %v523_v15, %v235_v31  ;;  %v1361_v18 = vmul.f32 %v523_v15, %v236_v34  ;;  %v352_v13 = vmul.f32 %v1338_v53, %v1255_v5  ;;  %v361_v16 = vrot.slane %v354_v17, 7 }
  0x97   :  { %1799 = vst [vmem:[#allocation23_spill] sm:$0xff] %v1357_v21  ;;  %v1369_v48 = vmul.f32 %v616_v19, %v235_v31  ;;  %v1371_v14 = vmul.f32 %v616_v19, %v236_v34  ;;  %v1373_v15 = vmul.f32 %v716_v20, %v235_v31  ;;  %v1375_v47 = vmul.f32 %v716_v20, %v236_v34 }
  0x98   :  { %v1380_v42 = vsel %vm172_vm1, %v361_v16, %v352_v13  ;;  %v1383_v17 = vsel %vm172_vm1, %v456_v50, %v448_v52  ;;  %v1393_v20 = vsel %vm172_vm1, %v416_v60, %v1234_v59 }
  0x99   :  { %1800 = vst [vmem:[#allocation24_spill] sm:$0xff] %v1371_v14  ;;  %v1417_v31 = vpop.permute.xlu2 %261 }
  0x9a   :  { %1801 = vst [vmem:[#allocation25_spill] sm:$0xff] %v1373_v15 }
  0x9b   :  { %1802 = vst [vmem:[#allocation26_spill] sm:$0xff] %v1375_v47 }
  0x9c   :  { %1803 = vst [vmem:[#allocation27_spill] sm:$0xff] %v1393_v20  ;;  %v1808_v20 = vstv %s1214_s28  ;;  %s1072_s28 = smov 16  }
  0xa0   :  { %v195_v39 = vpop.permute.xlu1 %194  ;;  %v178_v44 = vpop.permute.xlu0 %177 }
  0xa8   :  { %v197_v30 = vpop.permute.xlu1 %196  ;;  %v180_v50 = vpop.permute.xlu0 %179 }
  0xa9   :  { %v199_v16 = vsel %vm198_vm4, %v195_v39, %v197_v30  ;;  %v200_v34 = vsel %vm198_vm4, %v197_v30, %v195_v39  ;;  %v184_v60 = vsel %vm183_vm5, %v178_v44, %v180_v50  ;;  %v185_v30 = vsel %vm183_vm5, %v180_v50, %v178_v44 }
  0xaa   :  { %v208_v46 = vmul.f32 %v1783_v23, %v200_v34  ;;  %v209_v59 = vmul.f32 %v1782_v24, %v199_v16  ;;  %v192_v39 = vmul.f32 %v1781_v32, %v185_v30  ;;  %v193_v34 = vmul.f32 %v1780_v37, %v184_v60 }
  0xab   :  { %v1423_v30 = vmul.f32 %v1338_v53, %v1251_v4 }
  0xac   :  { %v303_v13 = vmul.f32 %v302_v25, %v208_v46  ;;  %v304_v60 = vmul.f32 %v302_v25, %v209_v59  ;;  %v400_v61 = vmul.f32 %v399_v26, %v208_v46  ;;  %v500_v19 = vmul.f32 %v499_v27, %v208_v46 }
  0xad   :  { %v501_v16 = vmul.f32 %v499_v27, %v209_v59  ;;  %v401_v52 = vmul.f32 %v399_v26, %v209_v59  ;;  %v593_v44 = vmul.f32 %v592_v29, %v208_v46  ;;  %v299_v50 = vmul.f32 %v298_v38, %v192_v39 }
  0xae   :  { %v300_v37 = vmul.f32 %v298_v38, %v193_v34  ;;  %v594_v32 = vmul.f32 %v592_v29, %v209_v59  ;;  %v396_v25 = vmul.f32 %v395_v40, %v192_v39  ;;  %v496_v43 = vmul.f32 %v495_v41, %v192_v39 }
  0xaf   :  { %v497_v24 = vmul.f32 %v495_v41, %v193_v34  ;;  %v1804_v27 = vstv %s1198_s24  ;;  %v397_v1 = vmul.f32 %v395_v40, %v193_v34  ;;  %v589_v15 = vmul.f32 %v1806_v0, %v192_v39  ;;  %s1653_s24 = sld [smem:[#allocation2 + $0x2d]] }
  0xb0   :  { %v693_v23 = vmul.f32 %v1804_v27, %v208_v46  ;;  %v1805_v26 = vmov %v1804_v27  ;;  %v240_v38 = vpop.permute.xlu1 %239  ;;  %v306_v57 = vadd.f32 %v304_v60, %v300_v37  ;;  %v402_v47 = vadd.f32 %v400_v61, %v396_v25  ;;  %v238_v63 = vpop.permute.xlu0 %237 }
  0xb1   :  { %v694_v45 = vmul.f32 %v1805_v26, %v209_v59  ;;  %v502_v29 = vadd.f32 %v500_v19, %v496_v43  ;;  %v503_v51 = vadd.f32 %v501_v16, %v497_v24  ;;  %v305_v54 = vadd.f32 %v303_v13, %v299_v50 }
  0xb2   :  { %v590_v21 = vmul.f32 %v1807_v58, %v193_v34  ;;  %v689_v12 = vmul.f32 %v1808_v20, %v192_v39  ;;  %v1809_v41 = vmov %v1808_v20  ;;  %v242_v0 = vsel %vm241_vm6, %v238_v63, %v240_v38  ;;  %v272_v39 = vpop.permute.xlu2 %271 }
  0xb3   :  { %v690_v14 = vmul.f32 %v1809_v41, %v193_v34  ;;  %v520_v46 = vadd.f32 %v1203_v35, %v502_v29  ;;  %v521_v40 = vadd.f32 %v1206_v36, %v503_v51  ;;  %v243_v24 = vsel %vm241_vm6, %v240_v38, %v238_v63 }
  0xb4   :  { %v1469_v37 = vadd.f32 %v401_v52, %v397_v1  ;;  %v595_v58 = vadd.f32 %v593_v44, %v589_v15  ;;  %v1810_v43 = vperm.slane %v1310_v33, 0  ;;  %v1811_v35 = vperm.slane %v1310_v33, 1 }
  0xb5   :  { %v526_v51 = vadd.f32 %v1359_v2, %v520_v46  ;;  %v527_v61 = vadd.f32 %v1361_v18, %v521_v40  ;;  %v324_v20 = vadd.f32 %v1265_v9, %v306_v57  ;;  %v420_v63 = vadd.f32 %v1270_v10, %v402_v47 }
  0xb6   :  { %v251_v19 = vmul.f32 %v1810_v43, %v242_v0  ;;  %v252_v36 = vmul.f32 %v1811_v35, %v243_v24  ;;  %v1479_v1 = vadd.f32 %v594_v32, %v590_v21  ;;  %v1481_v52 = vadd.f32 %v693_v23, %v689_v12 }
  0xb7   :  { %v1483_v15 = vadd.f32 %v694_v45, %v690_v14  ;;  %v1812_v13 = vstv %s1220_s29  ;;  %v1814_v44 = vstv %s1224_s30  ;;  %v1815_v2 = vstv %s1228_s5  ;;  %s1689_s29 = sld [smem:[#allocation2 + $0x31]] }
  0xb8   :  { %v333_v59 = vmul.f32 %v1812_v13, %v251_v19  ;;  %v1813_v34 = vmov %v1812_v13  ;;  %v430_v50 = vmul.f32 %v1814_v44, %v251_v19  ;;  %v530_v60 = vmul.f32 %v1815_v2, %v251_v19  ;;  %v270_v23 = vpop.permute.xlu1 %269  ;;  %v264_v14 = vpop.permute.xlu0 %263  ;;  %s1710_s30 = sld [smem:[#allocation2 + $0x25]] }
  0xb9   :  { %v334_v16 = vmul.f32 %v1813_v34, %v252_v36  ;;  %v1816_v18 = vmov %v1815_v2  ;;  %v1817_v57 = vmov %v1814_v44  ;;  %v1818_v10 = vstv %s1236_s0  ;;  %s1715_s5 = sld [smem:[#allocation2 + $0x26]]  ;;  %s1073_s0 = smov 112  }
  0xba   :  { %v531_v25 = vmul.f32 %v1816_v18, %v252_v36  ;;  %v1497_v9 = vmul.f32 %v1817_v57, %v252_v36  ;;  %v1501_v12 = vmul.f32 %v1818_v10, %v251_v19  ;;  %v330_v32 = vadd.f32 %v1347_v7, %v324_v20 }
  0xbb   :  { %v426_v45 = vadd.f32 %v1355_v62, %v420_v63  ;;  %v532_v47 = vadd.f32 %v530_v60, %v526_v51  ;;  %v273_v27 = vsel %vm198_vm4, %v270_v23, %v272_v39  ;;  %v274_v26 = vsel %vm198_vm4, %v272_v39, %v270_v23 }
  0xbc   :  { %v533_v21 = vadd.f32 %v531_v25, %v527_v61  ;;  %v265_v7 = vsel %vm183_vm5, %v1417_v31, %v264_v14  ;;  %v266_v62 = vsel %vm183_vm5, %v264_v14, %v1417_v31  ;;  %v1819_v38 = vperm.slane %v1262_v8, 0 }
  0xbd   :  { %v1820_v41 = vperm.slane %v1262_v8, 1  ;;  %v1821_v40 = vmov %v1818_v10  ;;  %v1822_v24 = vstv %s1242_s1  ;;  %v1823_v35 = vperm.slane %v1288_v22, 0  ;;  %s1726_s1 = sld [smem:[#allocation2 + $0x27]] }
  0xbe   :  { %v1521_v29 = vmul.f32 %v274_v26, %v1819_v38  ;;  %v1529_v0 = vmul.f32 %v1821_v40, %v252_v36  ;;  %v1533_v43 = vmul.f32 %v1822_v24, %v251_v19  ;;  %v1824_v51 = vperm.slane %v1288_v22, 1 }
  0xbf   :  { %v1525_v46 = vmul.f32 %v273_v27, %v1820_v41  ;;  %v1537_v31 = vmul.f32 %v266_v62, %v1823_v35  ;;  %v336_v20 = vadd.f32 %v334_v16, %v330_v32  ;;  %v1825_v8 = vstv %s1319_s12  ;;  %s852_s12 = sshll.u32 %s1777_s4, 4  ;;  %s853_s12 = int_to_ptr.hbm [resolvable:$true] %s852_s12 }
  0xc0   :  { %v1541_v61 = vmul.f32 %v265_v7, %v1824_v51  ;;  %v432_v13 = vadd.f32 %v430_v50, %v426_v45  ;;  %v1826_v39 = vstv %s1330_s14  ;;  %v1827_v19 = vstv %s1259_s3  ;;  %v282_v40 = vpop.permute.xlu0 %281  ;;  %s1074_s3 = smov 96  }
  0xc1   :  { %v346_v63 = vmul.f32 %v1825_v8, %v1525_v46  ;;  %v442_v34 = vmul.f32 %v1826_v39, %v1521_v29  ;;  %v536_v44 = vmul.f32 %v1827_v19, %v1537_v31  ;;  %v1828_v2 = vmov %v1827_v19 }
  0xc2   :  { %v537_v60 = vmul.f32 %v1828_v2, %v1541_v61  ;;  %v1829_v18 = vstv %s1296_s10  ;;  %v1830_v22 = vstv %s1325_s13  ;;  %v1831_v16 = vmov %v1822_v24 }
  0xc3   :  { %v340_v25 = vmul.f32 %v1829_v18, %v1541_v61  ;;  %v436_v57 = vmul.f32 %v1830_v22, %v1537_v31  ;;  %v1565_v10 = vmul.f32 %v1831_v16, %v252_v36  ;;  %v323_v50 = vadd.f32 %v1273_v11, %v305_v54  ;;  %v284_v36 = vpop.permute.xlu1 %283 }
  0xc4   :  { %v1832_v23 = vmov %v1829_v18  ;;  %v1833_v45 = vmov %v1825_v8  ;;  %v1576_v27 = vadd.f32 %v536_v44, %v532_v47  ;;  %v1578_v26 = vadd.f32 %v537_v60, %v533_v21 }
  0xc5   :  { %v339_v32 = vmul.f32 %v1832_v23, %v1537_v31  ;;  %v345_v14 = vmul.f32 %v1833_v45, %v1521_v29  ;;  %v342_v7 = vadd.f32 %v340_v25, %v336_v20  ;;  %v438_v62 = vadd.f32 %v436_v57, %v432_v13 }
  0xc6   :  { %v329_v38 = vadd.f32 %v1345_v56, %v323_v50  ;;  %v351_v11 = vmul.f32 %v1338_v53, %v1247_v3  ;;  %v359_v54 = vrot.slane %v1423_v30, 7  ;;  %v613_v41 = vadd.f32 %v1304_v28, %v595_v58  ;;  %v290_v50 = vpop.permute.xlu2 %289 }
  0xc7   :  { %v348_v47 = vadd.f32 %v346_v63, %v342_v7  ;;  %v444_v24 = vadd.f32 %v442_v34, %v438_v62  ;;  %v628_v21 = vstv %s1505_s18  ;;  %v634_v35 = vstv %s1511_s19 }
  0xc8   :  { %v285_v56 = vsel %vm225_vm3, %v282_v40, %v284_v36  ;;  %v286_v53 = vsel %vm225_vm3, %v284_v36, %v282_v40  ;;  %v335_v30 = vadd.f32 %v333_v59, %v329_v38  ;;  %v360_v28 = vsel %vm172_vm1, %v359_v54, %v351_v11 }
  0xc9   :  { %v1834_v58 = vperm.slane %v1257_v6, 0  ;;  %v1835_v20 = vperm.slane %v1257_v6, 1  ;;  %v366_v63 = vadd.f32 %v1380_v42, %v348_v47  ;;  %v462_v13 = vadd.f32 %v1383_v17, %v444_v24 }
  0xca   :  { %v1836_v39 = vstv %s1301_s11  ;;  %v341_v59 = vadd.f32 %v339_v32, %v335_v30  ;;  %v619_v19 = vadd.f32 %v1369_v48, %v613_v41  ;;  %v629_v44 = vmul.f32 %v628_v21, %v1537_v31 }
  0xcb   :  { %v1598_v51 = vmul.f32 %v285_v56, %v1834_v58  ;;  %v1602_v8 = vmul.f32 %v286_v53, %v1835_v20  ;;  %v1609_v34 = vmul.f32 %v1836_v39, %v1521_v29  ;;  %v1837_v6 = vmov %v1836_v39  ;;  %v1843_v39 = vld [vmem:[#allocation24_spill] sm:$0xff] }
  0xcc   :  { %v1616_v2 = vmul.f32 %v1837_v6, %v1525_v46  ;;  %v1838_v60 = vstv %s1340_s15  ;;  %v1839_v18 = vstv %s1353_s16  ;;  %v640_v25 = vstv %s1561_s20 }
  0xcd   :  { %v370_v42 = vmul.f32 %v1838_v60, %v1602_v8  ;;  %v466_v17 = vmul.f32 %v1839_v18, %v1598_v51  ;;  %v347_v22 = vadd.f32 %v345_v14, %v341_v59  ;;  %v625_v57 = vadd.f32 %v1501_v12, %v619_v19  ;;  %v292_v14 = vpop.permute.xlu0 %291  ;;  %v1844_v19 = vld [vmem:[#allocation21_spill] sm:$0xff] }
  0xce   :  { %v635_v16 = vmul.f32 %v634_v35, %v1521_v29  ;;  %v643_v48 = vmul.f32 %v640_v25, %v1251_v4  ;;  %v471_v23 = vstv %s1567_s21  ;;  %v1840_v32 = vmov %v1838_v60 }
  0xcf   :  { %v369_v45 = vmul.f32 %v1840_v32, %v1598_v51  ;;  %v641_v7 = vmul.f32 %v640_v25, %v1247_v3  ;;  %v658_v62 = vstv %s1580_s22  ;;  %v372_v36 = vadd.f32 %v370_v42, %v366_v63 }
  0xd0   :  { %v365_v38 = vadd.f32 %v360_v28, %v347_v22  ;;  %v631_v11 = vadd.f32 %v629_v44, %v625_v57  ;;  %v649_v54 = vrot.slane %v643_v48, 7  ;;  %v468_v41 = vadd.f32 %v466_v17, %v462_v13 }
  0xd1   :  { %v659_v12 = vmul.f32 %v658_v62, %v1598_v51  ;;  %v664_v40 = vstv %s1589_s23  ;;  %v614_v47 = vadd.f32 %v1333_v49, %v1479_v1  ;;  %v293_v24 = vsel %vm241_vm6, %v290_v50, %v292_v14 }
  0xd2   :  { %v294_v56 = vsel %vm241_vm6, %v292_v14, %v290_v50  ;;  %v637_v53 = vadd.f32 %v635_v16, %v631_v11  ;;  %v630_v30 = vmul.f32 %v628_v21, %v1541_v61  ;;  %v1841_v28 = vperm.slane %v1310_v33, 0  ;;  %v1845_v21 = vld [vmem:[#allocation27_spill] sm:$0xff] }
  0xd3   :  { %v1842_v20 = vperm.slane %v1310_v33, 1  ;;  %v650_v49 = vsel %vm172_vm1, %v649_v54, %v641_v7  ;;  %v642_v1 = vmul.f32 %v640_v25, %v1255_v5  ;;  %v620_v59 = vadd.f32 %v1843_v39, %v614_v47  ;;  %v1848_v7 = vld [vmem:[#allocation23_spill] sm:$0xff] }
  0xd4   :  { %v1645_v58 = vmul.f32 %v293_v24, %v1841_v28  ;;  %v655_v13 = vadd.f32 %v650_v49, %v637_v53  ;;  %v644_v44 = vmul.f32 %v640_v25, %v1844_v19  ;;  %v421_v6 = vadd.f32 %v1845_v21, %v1469_v37  ;;  %v1853_v49 = vld [vmem:[#allocation20_spill] sm:$0xff] }
  0xd5   :  { %v1649_v63 = vmul.f32 %v294_v56, %v1842_v20  ;;  %v1846_v33 = vstv %s1363_s17  ;;  %v371_v18 = vadd.f32 %v369_v45, %v365_v38  ;;  %v626_v57 = vadd.f32 %v1529_v0, %v620_v59  ;;  %v1850_v0 = vld [vmem:[#allocation19_spill] sm:$0xff] }
  0xd6   :  { %v472_v42 = vmul.f32 %v471_v23, %v1645_v58  ;;  %v1847_v17 = vmov %v1846_v33  ;;  %v665_v25 = vmul.f32 %v664_v40, %v1645_v58  ;;  %v636_v37 = vmul.f32 %v634_v35, %v1525_v46 }
  0xd7   :  { %v376_v60 = vmul.f32 %v1846_v33, %v1649_v63  ;;  %v375_v22 = vmul.f32 %v1847_v17, %v1645_v58  ;;  %v651_v16 = vrot.slane %v644_v44, 7  ;;  %v427_v11 = vadd.f32 %v1848_v7, %v421_v6 }
  0xd8   :  { %v474_v50 = vadd.f32 %v472_v42, %v468_v41  ;;  %v632_v45 = vadd.f32 %v630_v30, %v626_v57  ;;  %v660_v54 = vmul.f32 %v658_v62, %v1602_v8  ;;  %v1849_v14 = vstv %s1325_s13  ;;  %v1852_v30 = vld [vmem:[#allocation22_spill] sm:$0xff] }
  0xd9   :  { %v378_v48 = vadd.f32 %v376_v60, %v372_v36  ;;  %v377_v32 = vadd.f32 %v375_v22, %v371_v18  ;;  %v652_v38 = vsel %vm172_vm1, %v651_v16, %v642_v1  ;;  %v437_v47 = vmul.f32 %v1849_v14, %v1541_v61  ;;  %v1854_v1 = vld [vmem:[#allocation17_spill] sm:$0xff]  ;;  %v1857_v57 = vld [vmem:[#allocation26_spill] sm:$0xff] }
  0xda   :  { %v707_v24 = vrot.slane %v1850_v0, 7  ;;  %476 = vrot.lane.b32.xlu0 %v474_v50, %s1072_s28  ;;  %v661_v35 = vadd.f32 %v659_v12, %v655_v13  ;;  %v433_v36 = vadd.f32 %v1497_v9, %v427_v11  ;;  %v1851_v41 = vstv %s1330_s14 }
  0xdb   :  { %381 = vrot.lane.b32.xlu2 %v378_v48, %s1071_s2  ;;  %v443_v56 = vmul.f32 %v1851_v41, %v1525_v46  ;;  %379 = vrot.lane.b32.xlu1 %v377_v32, %s1071_s2  ;;  %v638_v62 = vadd.f32 %v636_v37, %v632_v45  ;;  %v666_v53 = vmul.f32 %v664_v40, %v1649_v63  ;;  %v1855_v13 = vrot.slane %v1854_v1, 7  ;;  %v1858_v45 = vld [vmem:[#allocation18_spill] sm:$0xff]  ;;  %v1859_v41 = vld [vmem:[#allocation25_spill] sm:$0xff] }
  0xdc   :  { %v449_v28 = vmul.f32 %v1852_v30, %v1255_v5  ;;  %v451_v12 = vmul.f32 %v1852_v30, %v1844_v19  ;;  %v667_v20 = vadd.f32 %v665_v25, %v661_v35  ;;  %v439_v9 = vadd.f32 %v437_v47, %v433_v36 }
  0xdd   :  { %v710_v39 = vsel %vm172_vm1, %v1855_v13, %v1853_v49  ;;  %v728_v59 = vstv %s1653_s24  ;;  %v656_v44 = vadd.f32 %v652_v38, %v638_v62  ;;  %v1856_v6 = vstv %s1353_s16 }
  0xde   :  { %v458_v21 = vrot.slane %v451_v12, 7  ;;  %v467_v40 = vmul.f32 %v1856_v6, %v1602_v8  ;;  %v714_v33 = vadd.f32 %v710_v39, %v1483_v15  ;;  %v445_v60 = vadd.f32 %v443_v56, %v439_v9 }
  0xdf   :  { %v473_v42 = vmul.f32 %v471_v23, %v1649_v63  ;;  %v734_v18 = vstv %s1670_s26  ;;  %v740_v17 = vstv %s1659_s25  ;;  %v662_v22 = vadd.f32 %v660_v54, %v656_v44 }
  0xe0   :  { %v459_v25 = vsel %vm172_vm1, %v458_v21, %v449_v28  ;;  %v720_v37 = vadd.f32 %v1857_v57, %v714_v33  ;;  %v730_v16 = vmul.f32 %v728_v59, %v1541_v61  ;;  %v742_v15 = vmul.f32 %v740_v17, %v1255_v5 }
  0xe1   :  { %v463_v48 = vadd.f32 %v459_v25, %v445_v60  ;;  %v744_v50 = vmul.f32 %v740_v17, %v1844_v19  ;;  %v758_v23 = vstv %s1676_s27  ;;  %v668_v32 = vadd.f32 %v666_v53, %v662_v22 }
  0xe2   :  { %v726_v7 = vadd.f32 %v1565_v10, %v720_v37  ;;  %v736_v11 = vmul.f32 %v734_v18, %v1525_v46  ;;  %v708_v38 = vsel %vm172_vm1, %v707_v24, %v1858_v45  ;;  %v764_v14 = vstv %s1689_s29 }
  0xe3   :  { %669 = vrot.lane.b32.xlu2 %v667_v20, %s1073_s0  ;;  %v469_v54 = vadd.f32 %v467_v40, %v463_v48  ;;  %v751_v61 = vrot.slane %v744_v50, 7  ;;  %v713_v47 = vadd.f32 %v708_v38, %v1481_v52  ;;  %671 = vrot.lane.b32.xlu0 %v668_v32, %s1073_s0  ;;  %v760_v35 = vmul.f32 %v758_v23, %v1602_v8  ;;  %v484_v50 = vld [vmem:[#allocation7 + $0x1] ss:$8 sm:$0x3] }
  0xe4   :  { %v732_v0 = vadd.f32 %v730_v16, %v726_v7  ;;  %v741_v10 = vmul.f32 %v740_v17, %v1247_v3  ;;  %v743_v46 = vmul.f32 %v740_v17, %v1251_v4  ;;  %v729_v62 = vmul.f32 %v728_v59, %v1537_v31  ;;  %v386_v32 = vld [vmem:[#allocation7] ss:$8 sm:$0x3] }
  0xe5   :  { %v475_v36 = vadd.f32 %v473_v42, %v469_v54  ;;  %v752_v24 = vsel %vm172_vm1, %v751_v61, %v742_v15  ;;  %v719_v56 = vadd.f32 %v1859_v41, %v713_v47  ;;  %v544_v30 = vadd.f32 %v1609_v34, %v1576_v27  ;;  %v577_v61 = vld [vmem:[#allocation7 + $0x2] ss:$8 sm:$0x3] }
  0xe6   :  { %v738_v52 = vadd.f32 %v736_v11, %v732_v0  ;;  %v749_v53 = vrot.slane %v743_v46, 7  ;;  %v545_v28 = vadd.f32 %v1616_v2, %v1578_v26  ;;  %v766_v12 = vmul.f32 %v764_v14, %v1649_v63 }
  0xe7   :  { %478 = vrot.lane.b32.xlu1 %v475_v36, %s1072_s28  ;;  %v725_v20 = vadd.f32 %v1533_v43, %v719_v56  ;;  %v735_v9 = vmul.f32 %v734_v18, %v1521_v29  ;;  %v547_v49 = vstv %s1710_s30  ;;  %v565_v39 = vstv %s1715_s5  ;;  %v677_v56 = vld [vmem:[#allocation7 + $0x3] ss:$8 sm:$0x3] }
  0xe8   :  { %v756_v1 = vadd.f32 %v752_v24, %v738_v52  ;;  %v750_v31 = vsel %vm172_vm1, %v749_v53, %v741_v10  ;;  %v548_v13 = vmul.f32 %v547_v49, %v1247_v3  ;;  %v549_v34 = vmul.f32 %v547_v49, %v1255_v5 }
  0xe9   :  { %v731_v27 = vadd.f32 %v729_v62, %v725_v20  ;;  %v550_v26 = vmul.f32 %v547_v49, %v1251_v4  ;;  %v551_v2 = vmul.f32 %v547_v49, %v1844_v19  ;;  %v759_v43 = vmul.f32 %v758_v23, %v1598_v51 }
  0xea   :  { %v762_v59 = vadd.f32 %v760_v35, %v756_v1  ;;  %v571_v6 = vstv %s1726_s1  ;;  %v566_v33 = vmul.f32 %v565_v39, %v1598_v51  ;;  %v567_v3 = vmul.f32 %v565_v39, %v1602_v8 }
  0xeb   :  { %v737_v44 = vadd.f32 %v735_v9, %v731_v27  ;;  %v556_v21 = vrot.slane %v550_v26, 7  ;;  %v558_v29 = vrot.slane %v551_v2, 7  ;;  %v765_v42 = vmul.f32 %v764_v14, %v1645_v58 }
  0xec   :  { %v768_v40 = vadd.f32 %v766_v12, %v762_v59  ;;  %v572_v17 = vmul.f32 %v571_v6, %v1645_v58  ;;  %v573_v22 = vmul.f32 %v571_v6, %v1649_v63  ;;  %v486_v7 = vperm.slane %v484_v50, 0 }
  0xed   :  { %v755_v60 = vadd.f32 %v750_v31, %v737_v44  ;;  %v557_v5 = vsel %vm172_vm1, %v556_v21, %v548_v13  ;;  %v559_v4 = vsel %vm172_vm1, %v558_v29, %v549_v34  ;;  %v487_v58 = vperm.slane %v484_v50, 1 }
  0xee   :  { %771 = vrot.lane.b32.xlu2 %v768_v40, %s1074_s3  ;;  %v562_v19 = vadd.f32 %v557_v5, %v544_v30  ;;  %v563_v18 = vadd.f32 %v559_v4, %v545_v28  ;;  %v388_v11 = vperm.slane %v386_v32, 0  ;;  %v389_v63 = vperm.slane %v386_v32, 1  ;;  %v777_v30 = vld [vmem:[#allocation7 + $0x4] ss:$8 sm:$0x3] }
  0xef   :  { %v761_v25 = vadd.f32 %v759_v43, %v755_v60  ;;  %v579_v24 = vperm.slane %v577_v61, 0  ;;  %v580_v41 = vperm.slane %v577_v61, 1  ;;  %v679_v28 = vperm.slane %v677_v56, 0 }
  0xf0   :  { %v568_v57 = vadd.f32 %v566_v33, %v562_v19  ;;  %v569_v51 = vadd.f32 %v567_v3, %v563_v18  ;;  %v680_v12 = vperm.slane %v677_v56, 1  ;;  %v779_v39 = vperm.slane %v777_v30, 0  ;;  %v1860_v56 = vld [vmem:[#allocation15_spill] sm:$0xff] }
  0xf1   :  { %v767_v37 = vadd.f32 %v765_v42, %v761_v25  ;;  %v780_v27 = vperm.slane %v777_v30, 1  ;;  %vm828_vm4 = vcmask 1040384  }
  0xf2   :  { %v574_v8 = vadd.f32 %v572_v17, %v568_v57  ;;  %v575_v16 = vadd.f32 %v573_v22, %v569_v51 }
  0xf3   :  { %769 = vrot.lane.b32.xlu1 %v767_v37, %s1074_s3 }
  0xf4   :  { %v583_v20 = vmul.f32 %v579_v24, %v574_v8  ;;  %v584_v9 = vmul.f32 %v580_v41, %v575_v16 }
 0x135   :  { %v382_v15 = vpop.permute.xlu2 %381 }
 0x13d   :  { %v670_v0 = vpop.permute.xlu2 %669 }
 0x148   :  { %v772_v34 = vpop.permute.xlu2 %771 }
 0x14c   :  { %v477_v23 = vpop.permute.xlu0 %476 }
 0x14d   :  { %v380_v48 = vpop.permute.xlu1 %379 }
 0x14e   :  { %v384_v38 = vsel %vm383_vm7, %v380_v48, %v382_v15  ;;  %v385_v54 = vsel %vm383_vm7, %v382_v15, %v380_v48 }
 0x14f   :  { %v392_v46 = vmul.f32 %v388_v11, %v385_v54  ;;  %v393_v36 = vmul.f32 %v389_v63, %v384_v38 }
 0x155   :  { %v672_v62 = vpop.permute.xlu0 %671 }
 0x156   :  { %v674_v49 = vsel %vm673_vm9, %v670_v0, %v672_v62  ;;  %v675_v1 = vsel %vm673_vm9, %v672_v62, %v670_v0 }
 0x157   :  { %v683_v26 = vmul.f32 %v679_v28, %v674_v49  ;;  %v684_v2 = vmul.f32 %v680_v12, %v675_v1 }
 0x159   :  { %v479_v45 = vpop.permute.xlu1 %478 }
 0x15a   :  { %v481_v14 = vsel %vm480_vm8, %v477_v23, %v479_v45  ;;  %v482_v47 = vsel %vm480_vm8, %v479_v45, %v477_v23 }
 0x15b   :  { %v490_v35 = vmul.f32 %v486_v7, %v482_v47  ;;  %v491_v10 = vmul.f32 %v487_v58, %v481_v14 }
 0x15d   :  { %v492_v52 = vadd.f32 %v490_v35, %v392_v46  ;;  %v493_v53 = vadd.f32 %v491_v10, %v393_v36 }
 0x15f   :  { %v585_v31 = vadd.f32 %v583_v20, %v492_v52  ;;  %v586_v13 = vadd.f32 %v584_v9, %v493_v53  ;;  %v1861_v53 = vld [vmem:[#allocation16_spill] sm:$0xff] }
 0x161   :  { %v685_v21 = vadd.f32 %v683_v26, %v585_v31  ;;  %v686_v29 = vadd.f32 %v684_v2, %v586_v13 }
 0x165   :  { %v770_v59 = vpop.permute.xlu1 %769 }
 0x166   :  { %v774_v43 = vsel %vm773_vm10, %v770_v59, %v772_v34  ;;  %v775_v44 = vsel %vm773_vm10, %v772_v34, %v770_v59 }
 0x167   :  { %v783_v6 = vmul.f32 %v779_v39, %v774_v43  ;;  %v784_v40 = vmul.f32 %v780_v27, %v775_v44 }
 0x169   :  { %v785_v33 = vadd.f32 %v783_v6, %v685_v21  ;;  %v786_v3 = vadd.f32 %v784_v40, %v686_v29 }
 0x16b   :  { %v916_v60 = vmul.f32 -1.442695, %v785_v33  ;;  %v917_v42 = vmul.f32 -1.442695, %v786_v3 }
 0x16d   :  { %936 = vpow2.f32 %v916_v60 }
 0x16e   :  { %938 = vpow2.f32 %v917_v42 }
 0x173   :  { %v937_v55 = vpop.eup %936 }
 0x174   :  { %v939_v5 = vpop.eup %938  ;;  %v793_v4 = vadd.f32 1.0, %v937_v55 }
 0x175   :  { %v794_v19 = vadd.f32 1.0, %v939_v5 }
 0x176   :  { %940 = vrcp.f32 %v793_v4  ;;  %vm800_vm13 = vweird.f32 %v793_v4  ;;  %v806_v50 = vand.u32 2147483648, %v793_v4  ;;  %v804_v23 = vand.u32 2147483647, %v793_v4 }
 0x177   :  { %942 = vrcp.f32 %v794_v19  ;;  %v821_v37 = vand.u32 2147483648, %v794_v19  ;;  %v819_v48 = vand.u32 2147483647, %v794_v19  ;;  %vm815_vm14 = vweird.f32 %v794_v19 }
 0x178   :  { %v807_v63 = vor.u32 1.1754944e-38, %v806_v50  ;;  %vm805_vm5 = vcmp.eq.f32.partialorder %v804_v23, 8.507059e+37 }
 0x179   :  { %v822_v7 = vor.u32 1.1754944e-38, %v821_v37  ;;  %vm820_vm3 = vcmp.eq.f32.partialorder %v819_v48, 8.507059e+37 }
 0x17c   :  { %v941_v18 = vpop.eup %940 }
 0x17d   :  { %v943_v17 = vpop.eup %942  ;;  %v796_v22 = vmul.f32 %v941_v18, %v793_v4  ;;  %vm801_vm11 = vweird.f32 %v941_v18 }
 0x17e   :  { %v811_v25 = vmul.f32 %v943_v17, %v794_v19  ;;  %vm816_vm12 = vweird.f32 %v943_v17  ;;  %vm802_vm15 = vmor %vm800_vm13, %vm801_vm11 }
 0x17f   :  { %v797_v57 = vsub.f32 1.0, %v796_v22  ;;  %vm817_vm2 = vmor %vm815_vm14, %vm816_vm12 }
 0x180   :  { %v812_v51 = vsub.f32 1.0, %v811_v25 }
 0x181   :  { %v798_v8 = vmul.f32 %v941_v18, %v797_v57 }
 0x182   :  { %v813_v16 = vmul.f32 %v943_v17, %v812_v51 }
 0x183   :  { %v799_v15 = vadd.f32 %v941_v18, %v798_v8 }
 0x184   :  { %v814_v32 = vadd.f32 %v943_v17, %v813_v16 }
 0x185   :  { %v803_v58 = vsel %vm802_vm15, %v941_v18, %v799_v15 }
 0x186   :  { %v818_v11 = vsel %vm817_vm2, %v943_v17, %v814_v32  ;;  %v808_v54 = vsel %vm805_vm5, %v807_v63, %v803_v58 }
 0x187   :  { %v823_v45 = vsel %vm820_vm3, %v822_v7, %v818_v11 }
 0x188   :  { %v827_v38 = vrot.slane %v823_v45, 7 }
 0x18a   :  { %v829_v61 = vsel %vm828_vm4, %v808_v54, %v827_v38  ;;  %v830_v14 = vsel %vm172_vm1, %v808_v54, %v827_v38 }
 0x18b   :  { %v831_v47 = vrot.slane %v830_v14, 1  ;;  %v833_v0 = vperm.slane %v829_v61, 1  ;;  %v832_v35 = vperm.slane %v829_v61, 0 }
 0x18d   :  { %v835_v10 = vperm.slane %v831_v47, 1  ;;  %v836_v46 = vrot.slane %v833_v0, 4  ;;  %v834_v36 = vperm.slane %v831_v47, 0 }
 0x18f   :  { %v837_v24 = vrot.slane %v835_v10, 4  ;;  %v838_v41 = vsel %vm89_vm0, %v832_v35, %v836_v46 }
 0x190   :  { %v842_v62 = vmul.f32 %v838_v41, %v1860_v56 }
 0x191   :  { %v839_v52 = vsel %vm89_vm0, %v834_v36, %v837_v24 }
 0x192   :  { %v843_v30 = vmul.f32 %v839_v52, %v1861_v53  ;;  %844 = vst [vmem:[#allocation10] sm:$0xff] %v842_v62 }
 0x194   :  { %845 = vst [vmem:[#allocation10 + $0x8] sm:$0xff] %v843_v30 }
 0x195   :  { %858 = dma.vmem_to_hbm [thread:$0]  %s851_s9, 256, %s853_s12, [#allocation4], %s1064_s6, %s1064_s6, %s1065_s7  }
 0x196   :  { %1058 = dma.done.wait [#allocation4], 256  }
 0x197   :  { %1059 = vsyncadd [#allocation4], 4294967040 }
 0x198   :  { %863 = vsyncpa [#allocation3], 1 }
 0x199   :  { %864 = vsyncpa [#allocation8], 1 }
 0x19a   :  { %865 = vsyncpa [#allocation4], 1 }
 0x19b   :  { %866 = vsyncpa [#allocation5], 1 }

</bundles_post_ra>
